<compile_context>
chip_gen: v7x
topology: tpu7x:2x2x1
jax: 0.10.0
libtpu: 0.0.40
codegen_flags: <defaults>
</compile_context>

<pallas_src>
import math

import jax
import jax.numpy as jnp
from jax.experimental import pallas as pl
from jax.experimental.pallas import tpu as pltpu

ALPHA = 0.2           # LeakyReLU negative slope used by GraphAttention
NEG_INF = -9e15       # mask value from the reference implementation


def _gat_block(h, adjb, a_src, a_dst_row):
    """Masked graph attention over a block-diagonal group of graphs.

    h:         (R, F)  projected node features for all graphs of the group
    adjb:      (R, R)  block-diagonal 0/1 adjacency (zero outside each graph's block)
    a_src:     (F, 1)  first half of the torch Linear(2F, 1) weight (column)
    a_dst_row: (1, F)  second half of that weight (row)
    returns    (R, F)  softmax(mask(leakyrelu(e))) @ h
    """
    # f_src as a column, f_dst as a row -> e via a single VPU broadcast add
    # (no per-graph batched matmuls, no aug-matrix construction).
    f_src = jnp.dot(h, a_src, preferred_element_type=jnp.float32)            # (R, 1)
    f_dst = jnp.dot(a_dst_row, jnp.transpose(h),
                    preferred_element_type=jnp.float32)                       # (1, R)
    e = f_src + f_dst                                                          # (R, R)

    e = jnp.where(e > 0, e, ALPHA * e)            # LeakyReLU(0.2)
    e = jnp.where(adjb > 0, e, NEG_INF)           # adjacency + group mask
    e = e - jnp.max(e, axis=1, keepdims=True)     # softmax over neighbours (dim=1 in torch)
    p = jnp.exp(e)
    denom = jnp.sum(p, axis=1, keepdims=True)     # >= 1 because of the max subtraction
    r = pl.reciprocal(denom, approx=True)         # EUP slot (off the VPU/MXU path)
    r = r * (2.0 - denom * r)                     # one Newton step -> f32 accuracy
    att = p * r
    # TODO(synk): F.dropout(attention, 0.6) omitted — deterministic inference path.
    return jnp.dot(att, h, preferred_element_type=jnp.float32)                # (R, F)


def critic_kernel(x_ref, adjb_ref,
                  w1_ref, a1s_ref, a1d_ref,
                  w2_ref, a2s_ref, a2d_ref,
                  fc1w_ref, fc2w_ref, fc3w_ref, bias_ref,
                  out_ref):
    adjb = adjb_ref[...]                                                       # (R, R)

    # GAT layer 1 (fused W1: the state/action concat was done once in the wrapper).
    h1 = jnp.dot(x_ref[...], w1_ref[...], preferred_element_type=jnp.float32)  # (R, 64)
    g1 = jnp.maximum(_gat_block(h1, adjb, a1s_ref[...], a1d_ref[...]), 0.0)

    # GAT layer 2
    h2 = jnp.dot(g1, w2_ref[...], preferred_element_type=jnp.float32)          # (R, 32)
    g2 = jnp.maximum(_gat_block(h2, adjb, a2s_ref[...], a2d_ref[...]), 0.0)

    # FC head (biases packed in one (3, 64) slab).
    z = jnp.maximum(
        jnp.dot(g2, fc1w_ref[...], preferred_element_type=jnp.float32)
        + bias_ref[0:1, :], 0.0)
    z = jnp.maximum(
        jnp.dot(z, fc2w_ref[...], preferred_element_type=jnp.float32)
        + bias_ref[1:2, :], 0.0)

    # fc3 (64 -> 1) computed transposed so Q lands lane-dense: (1,64) @ (64,R) -> (1,R).
    q_row = (jnp.dot(fc3w_ref[...], jnp.transpose(z),
                     preferred_element_type=jnp.float32)
             + bias_ref[2:3, 0:1])
    out_ref[...] = q_row.reshape(out_ref.shape)


def critic_forward(state, action, adj, params, *, graphs_per_tile=None):
    """Batched critic: state (B,N,S), action (B,N,A), adj (B,N,N) -> Q (B,N,1)."""
    b, n, s_dim = state.shape
    a_dim = action.shape[-1]
    sa = s_dim + a_dim

    if graphs_per_tile is None:
        step = 8 // math.gcd(n, 8)                 # smallest g with (g*n) % 8 == 0
        target = max(1, 128 // n)                  # ~128 nodes per group (MXU/lane native)
        graphs_per_tile = max(step, (target // step) * step)
    bt = graphs_per_tile
    if (bt * n) % 8 != 0:
        raise ValueError("graphs_per_tile * n_agents must be a multiple of 8")
    rows = bt * n

    pad = (-b) % bt
    if pad:
        state = jnp.concatenate([state, jnp.zeros((pad, n, s_dim), state.dtype)], 0)
        action = jnp.concatenate([action, jnp.zeros((pad, n, a_dim), action.dtype)], 0)
        adj = jnp.concatenate([adj, jnp.zeros((pad, n, n), adj.dtype)], 0)
    bp = b + pad
    num_tiles = bp // bt

    # One streamed activation operand: concat([state, action]) flattened to node rows.
    x = jnp.concatenate([state, action], axis=-1).astype(jnp.float32)
    x = x.reshape(bp * n, sa)

    # Block-diagonal group adjacency, built once here so the kernel's mask/softmax
    # chain runs on a dense (rows, rows) tile (lane-dense last dim).
    adj_f = adj.astype(jnp.float32).reshape(num_tiles, bt, n, n)
    eye_bt = jnp.eye(bt, dtype=jnp.float32)
    adjb = (adj_f[:, :, :, None, :] * eye_bt[:, None, :, None])
    adjb = adjb.reshape(num_tiles * rows, rows)

    # Pack the three FC biases into one slab (fewer operands / DMA descriptors).
    bias = jnp.zeros((3, 64), jnp.float32)
    bias = bias.at[0, :].set(params["fc1_b"])
    bias = bias.at[1, :].set(params["fc2_b"])
    bias = bias.at[2, 0].set(params["fc3_b"][0])

    a1_src = params["a1"][:, 0:1]                   # (64, 1)
    a1_dst = params["a1"][:, 1:2].T                 # (1, 64)
    a2_src = params["a2"][:, 0:1]                   # (32, 1)
    a2_dst = params["a2"][:, 1:2].T                 # (1, 32)
    fc3w_row = params["fc3_w"].reshape(1, 64)       # (1, 64): fc3 applied transposed

    weights = (params["w1"], a1_src, a1_dst,
               params["w2"], a2_src, a2_dst,
               params["fc1_w"], params["fc2_w"], fc3w_row, bias)

    def weight_spec(w):
        # Constant index map -> fetched once, stays resident in VMEM across the grid.
        return pl.BlockSpec(w.shape, lambda i: (0, 0))

    in_specs = ([pl.BlockSpec((rows, sa), lambda i: (i, 0)),
                 pl.BlockSpec((rows, rows), lambda i: (i, 0))]
                + [weight_spec(w) for w in weights])

    # TODO(synk): bf16 storage for the streamed activations skipped to preserve
    # 1e-4 parity with the f32 reference (kernel is overhead-bound at this size).
    out = pl.pallas_call(
        critic_kernel,
        out_shape=jax.ShapeDtypeStruct((num_tiles, 1, rows), jnp.float32),
        grid=(num_tiles,),
        in_specs=in_specs,
        out_specs=pl.BlockSpec((1, 1, rows), lambda i: (i, 0, 0)),
        compiler_params=pltpu.CompilerParams(
            dimension_semantics=("parallel",)),
    )(x, adjb, *weights)

    return out.reshape(bp, n, 1)[:b]


def init_params(key, state_dim, action_dim):
    """Deterministic synthetic parameters matching the module's shapes."""
    ks = jax.random.split(key, 10)
    s = 0.1
    return {
        # gat1: fused W (state_dim+action_dim -> 64); a (2*64 -> 1) as (64, 2) columns
        "w1":   s * jax.random.normal(ks[0], (state_dim + action_dim, 64), jnp.float32),
        "a1":   s * jax.random.normal(ks[1], (64, 2), jnp.float32),
        # gat2
        "w2":   s * jax.random.normal(ks[2], (64, 32), jnp.float32),
        "a2":   s * jax.random.normal(ks[3], (32, 2), jnp.float32),
        # fc head
        "fc1_w": s * jax.random.normal(ks[4], (32, 64), jnp.float32),
        "fc1_b": s * jax.random.normal(ks[5], (64,), jnp.float32),
        "fc2_w": s * jax.random.normal(ks[6], (64, 64), jnp.float32),
        "fc2_b": s * jax.random.normal(ks[7], (64,), jnp.float32),
        "fc3_w": s * jax.random.normal(ks[8], (64, 1), jnp.float32),
        "fc3_b": s * jax.random.normal(ks[9], (1,), jnp.float32),
    }


def reference_forward(state, action, adj, params):
    """Plain-JAX replica of the PyTorch forward (cat/repeat semantics), vmapped over B."""

    def gat(h_in, adj1, w, a_cat):
        h = h_in @ w
        n = h.shape[0]
        a_vec = jnp.concatenate([a_cat[:, 0:1], a_cat[:, 1:2]], axis=0)   # (2F, 1)
        rep_i = jnp.repeat(h, n, axis=0)                                  # repeat_interleave
        rep_j = jnp.tile(h, (n, 1))                                       # repeat(N, 1)
        a_in = jnp.concatenate([rep_i, rep_j], axis=1)
        e = (a_in @ a_vec)[:, 0]
        e = jnp.where(e > 0, e, ALPHA * e).reshape(n, n)
        att = jnp.where(adj1 > 0, e, NEG_INF)
        att = jax.nn.softmax(att, axis=1)
        return att @ h

    def single(s, a, adj1):
        x = jnp.concatenate([s, a], axis=1)
        x = jax.nn.relu(gat(x, adj1, params["w1"], params["a1"]))
        x = jax.nn.relu(gat(x, adj1, params["w2"], params["a2"]))
        x = jax.nn.relu(x @ params["fc1_w"] + params["fc1_b"])
        x = jax.nn.relu(x @ params["fc2_w"] + params["fc2_b"])
        return x @ params["fc3_w"] + params["fc3_b"]

    return jax.vmap(single)(state, action, adj)


if __name__ == "__main__":
    BATCH = 32
    N_AGENTS = 8
    STATE_DIM = 12
    ACTION_DIM = 4

    key = jax.random.PRNGKey(0)
    k_state, k_action, k_adj, k_params = jax.random.split(key, 4)

    state = jax.random.normal(k_state, (BATCH, N_AGENTS, STATE_DIM), jnp.float32)
    action = jax.random.normal(k_action, (BATCH, N_AGENTS, ACTION_DIM), jnp.float32)
    adj = (jax.random.uniform(k_adj, (BATCH, N_AGENTS, N_AGENTS)) > 0.5).astype(jnp.float32)
    adj = jnp.maximum(adj, jnp.eye(N_AGENTS, dtype=jnp.float32))   # self-loops

    params = init_params(k_params, STATE_DIM, ACTION_DIM)

    out = jax.block_until_ready(critic_forward(state, action, adj, params))

    ref = reference_forward(state, action, adj, params)
    assert out.shape == (BATCH, N_AGENTS, 1)
    assert jnp.allclose(out, ref, rtol=1e-4, atol=1e-4), float(jnp.max(jnp.abs(out - ref)))

    print("KERNEL_OK")
</pallas_src>

<mosaic_0001>
module attributes {stable_mosaic.version = 11 : i64} {
  func.func @critic_kernel(%arg0: i32, %arg1: memref<128x16xf32, #tpu.memory_space<vmem>>, %arg2: memref<128x128xf32, #tpu.memory_space<vmem>>, %arg3: memref<16x64xf32, #tpu.memory_space<vmem>>, %arg4: memref<64x1xf32, #tpu.memory_space<vmem>>, %arg5: memref<1x64xf32, #tpu.memory_space<vmem>>, %arg6: memref<64x32xf32, #tpu.memory_space<vmem>>, %arg7: memref<32x1xf32, #tpu.memory_space<vmem>>, %arg8: memref<1x32xf32, #tpu.memory_space<vmem>>, %arg9: memref<32x64xf32, #tpu.memory_space<vmem>>, %arg10: memref<64x64xf32, #tpu.memory_space<vmem>>, %arg11: memref<1x64xf32, #tpu.memory_space<vmem>>, %arg12: memref<3x64xf32, #tpu.memory_space<vmem>>, %arg13: memref<1x1x128xf32, #tpu.memory_space<vmem>>) attributes {dimension_semantics = [#tpu.dimension_semantics<parallel>], iteration_bounds = array<i64: 2>, scalar_prefetch = 0 : i64, scratch_operands = 0 : i64, tpu.core_type = #tpu.core_type<tc>, window_params = [{transform_indices = @transform_0, window_bounds = array<i64: 128, 16>}, {transform_indices = @transform_1, window_bounds = array<i64: 128, 128>}, {pipeline_mode = #tpu.pipeline_mode<synchronous>, transform_indices = @transform_2, window_bounds = array<i64: 16, 64>}, {pipeline_mode = #tpu.pipeline_mode<synchronous>, transform_indices = @transform_3, window_bounds = array<i64: 64, 1>}, {pipeline_mode = #tpu.pipeline_mode<synchronous>, transform_indices = @transform_4, window_bounds = array<i64: 1, 64>}, {pipeline_mode = #tpu.pipeline_mode<synchronous>, transform_indices = @transform_5, window_bounds = array<i64: 64, 32>}, {pipeline_mode = #tpu.pipeline_mode<synchronous>, transform_indices = @transform_6, window_bounds = array<i64: 32, 1>}, {pipeline_mode = #tpu.pipeline_mode<synchronous>, transform_indices = @transform_7, window_bounds = array<i64: 1, 32>}, {pipeline_mode = #tpu.pipeline_mode<synchronous>, transform_indices = @transform_8, window_bounds = array<i64: 32, 64>}, {pipeline_mode = #tpu.pipeline_mode<synchronous>, transform_indices = @transform_9, window_bounds = array<i64: 64, 64>}, {pipeline_mode = #tpu.pipeline_mode<synchronous>, transform_indices = @transform_10, window_bounds = array<i64: 1, 64>}, {pipeline_mode = #tpu.pipeline_mode<synchronous>, transform_indices = @transform_11, window_bounds = array<i64: 3, 64>}, {transform_indices = @transform_12, window_bounds = array<i64: 1, 1, 128>}]} {
    %c0 = arith.constant 0 : index
    %c0_0 = arith.constant 0 : index
    %0 = vector.load %arg2[%c0, %c0_0] : memref<128x128xf32, #tpu.memory_space<vmem>>, vector<128x128xf32>
    %c0_1 = arith.constant 0 : index
    %c0_2 = arith.constant 0 : index
    %1 = vector.load %arg1[%c0_1, %c0_2] : memref<128x16xf32, #tpu.memory_space<vmem>>, vector<128x16xf32>
    %c0_3 = arith.constant 0 : index
    %c0_4 = arith.constant 0 : index
    %2 = vector.load %arg3[%c0_3, %c0_4] : memref<16x64xf32, #tpu.memory_space<vmem>>, vector<16x64xf32>
    %cst = arith.constant dense<0.000000e+00> : vector<128x64xf32>
    %3 = tpu.matmul %1, %2, %cst {dimension_numbers = #tpu.dot_dimension_numbers<[1], [0], [0], [1], [0, 0, 1, 1], [], []>} : vector<128x16xf32>, vector<16x64xf32>, vector<128x64xf32> -> vector<128x64xf32>
    %c0_5 = arith.constant 0 : index
    %c0_6 = arith.constant 0 : index
    %4 = vector.load %arg4[%c0_5, %c0_6] : memref<64x1xf32, #tpu.memory_space<vmem>>, vector<64x1xf32>
    %c0_7 = arith.constant 0 : index
    %c0_8 = arith.constant 0 : index
    %5 = vector.load %arg5[%c0_7, %c0_8] : memref<1x64xf32, #tpu.memory_space<vmem>>, vector<1x64xf32>
    %cst_9 = arith.constant dense<0.000000e+00> : vector<128x1xf32>
    %6 = tpu.matmul %3, %4, %cst_9 {dimension_numbers = #tpu.dot_dimension_numbers<[1], [0], [0], [1], [0, 0, 1, 1], [], []>} : vector<128x64xf32>, vector<64x1xf32>, vector<128x1xf32> -> vector<128x1xf32>
    %7 = tpu.transpose %3, [1, 0] : vector<128x64xf32> -> vector<64x128xf32>
    %cst_10 = arith.constant dense<0.000000e+00> : vector<1x128xf32>
    %8 = tpu.matmul %5, %7, %cst_10 {dimension_numbers = #tpu.dot_dimension_numbers<[1], [0], [0], [1], [0, 0, 1, 1], [], []>} : vector<1x64xf32>, vector<64x128xf32>, vector<1x128xf32> -> vector<1x128xf32>
    %9 = vector.broadcast %6 : vector<128x1xf32> to vector<128x128xf32>
    %10 = vector.broadcast %8 : vector<1x128xf32> to vector<128x128xf32>
    %11 = arith.addf %9, %10 : vector<128x128xf32>
    %cst_11 = arith.constant 0.000000e+00 : f32
    %12 = vector.broadcast %cst_11 : f32 to vector<128x128xf32>
    %13 = arith.cmpf ogt, %11, %12 : vector<128x128xf32>
    %cst_12 = arith.constant 2.000000e-01 : f32
    %14 = vector.broadcast %cst_12 : f32 to vector<128x128xf32>
    %15 = arith.mulf %14, %11 : vector<128x128xf32>
    %16 = arith.select %13, %11, %15 : vector<128x128xi1>, vector<128x128xf32>
    %cst_13 = arith.constant 0.000000e+00 : f32
    %17 = vector.broadcast %cst_13 : f32 to vector<128x128xf32>
    %18 = arith.cmpf ogt, %0, %17 : vector<128x128xf32>
    %cst_14 = arith.constant -9.000000e+15 : f32
    %19 = vector.broadcast %cst_14 : f32 to vector<128x128xf32>
    %20 = arith.select %18, %16, %19 : vector<128x128xi1>, vector<128x128xf32>
    %cst_15 = arith.constant dense<0xFF800000> : vector<128xf32>
    %21 = vector.multi_reduction <maximumf>, %20, %cst_15 [1] : vector<128x128xf32> to vector<128xf32>
    %22 = vector.shape_cast %21 : vector<128xf32> to vector<128x1xf32>
    %23 = vector.broadcast %22 : vector<128x1xf32> to vector<128x128xf32>
    %24 = arith.subf %20, %23 : vector<128x128xf32>
    %25 = math.exp %24 : vector<128x128xf32>
    %cst_16 = arith.constant dense<0.000000e+00> : vector<128xf32>
    %26 = vector.multi_reduction <add>, %25, %cst_16 [1] : vector<128x128xf32> to vector<128xf32>
    %27 = vector.shape_cast %26 : vector<128xf32> to vector<128x1xf32>
    %28 = tpu.reciprocal %27 {approx = true} : vector<128x1xf32> -> vector<128x1xf32>
    %29 = arith.mulf %27, %28 : vector<128x1xf32>
    %cst_17 = arith.constant 2.000000e+00 : f32
    %30 = vector.broadcast %cst_17 : f32 to vector<128x1xf32>
    %31 = arith.subf %30, %29 : vector<128x1xf32>
    %32 = arith.mulf %28, %31 : vector<128x1xf32>
    %33 = vector.broadcast %32 : vector<128x1xf32> to vector<128x128xf32>
    %34 = arith.mulf %25, %33 : vector<128x128xf32>
    %cst_18 = arith.constant dense<0.000000e+00> : vector<128x64xf32>
    %35 = tpu.matmul %34, %3, %cst_18 {dimension_numbers = #tpu.dot_dimension_numbers<[1], [0], [0], [1], [0, 0, 1, 1], [], []>} : vector<128x128xf32>, vector<128x64xf32>, vector<128x64xf32> -> vector<128x64xf32>
    %cst_19 = arith.constant 0.000000e+00 : f32
    %36 = vector.broadcast %cst_19 : f32 to vector<128x64xf32>
    %37 = arith.maximumf %35, %36 : vector<128x64xf32>
    %c0_20 = arith.constant 0 : index
    %c0_21 = arith.constant 0 : index
    %38 = vector.load %arg6[%c0_20, %c0_21] : memref<64x32xf32, #tpu.memory_space<vmem>>, vector<64x32xf32>
    %cst_22 = arith.constant dense<0.000000e+00> : vector<128x32xf32>
    %39 = tpu.matmul %37, %38, %cst_22 {dimension_numbers = #tpu.dot_dimension_numbers<[1], [0], [0], [1], [0, 0, 1, 1], [], []>} : vector<128x64xf32>, vector<64x32xf32>, vector<128x32xf32> -> vector<128x32xf32>
    %c0_23 = arith.constant 0 : index
    %c0_24 = arith.constant 0 : index
    %40 = vector.load %arg7[%c0_23, %c0_24] : memref<32x1xf32, #tpu.memory_space<vmem>>, vector<32x1xf32>
    %c0_25 = arith.constant 0 : index
    %c0_26 = arith.constant 0 : index
    %41 = vector.load %arg8[%c0_25, %c0_26] : memref<1x32xf32, #tpu.memory_space<vmem>>, vector<1x32xf32>
    %cst_27 = arith.constant dense<0.000000e+00> : vector<128x1xf32>
    %42 = tpu.matmul %39, %40, %cst_27 {dimension_numbers = #tpu.dot_dimension_numbers<[1], [0], [0], [1], [0, 0, 1, 1], [], []>} : vector<128x32xf32>, vector<32x1xf32>, vector<128x1xf32> -> vector<128x1xf32>
    %43 = tpu.transpose %39, [1, 0] : vector<128x32xf32> -> vector<32x128xf32>
    %cst_28 = arith.constant dense<0.000000e+00> : vector<1x128xf32>
    %44 = tpu.matmul %41, %43, %cst_28 {dimension_numbers = #tpu.dot_dimension_numbers<[1], [0], [0], [1], [0, 0, 1, 1], [], []>} : vector<1x32xf32>, vector<32x128xf32>, vector<1x128xf32> -> vector<1x128xf32>
    %45 = vector.broadcast %42 : vector<128x1xf32> to vector<128x128xf32>
    %46 = vector.broadcast %44 : vector<1x128xf32> to vector<128x128xf32>
    %47 = arith.addf %45, %46 : vector<128x128xf32>
    %cst_29 = arith.constant 0.000000e+00 : f32
    %48 = vector.broadcast %cst_29 : f32 to vector<128x128xf32>
    %49 = arith.cmpf ogt, %47, %48 : vector<128x128xf32>
    %cst_30 = arith.constant 2.000000e-01 : f32
    %50 = vector.broadcast %cst_30 : f32 to vector<128x128xf32>
    %51 = arith.mulf %50, %47 : vector<128x128xf32>
    %52 = arith.select %49, %47, %51 : vector<128x128xi1>, vector<128x128xf32>
    %cst_31 = arith.constant 0.000000e+00 : f32
    %53 = vector.broadcast %cst_31 : f32 to vector<128x128xf32>
    %54 = arith.cmpf ogt, %0, %53 : vector<128x128xf32>
    %cst_32 = arith.constant -9.000000e+15 : f32
    %55 = vector.broadcast %cst_32 : f32 to vector<128x128xf32>
    %56 = arith.select %54, %52, %55 : vector<128x128xi1>, vector<128x128xf32>
    %cst_33 = arith.constant dense<0xFF800000> : vector<128xf32>
    %57 = vector.multi_reduction <maximumf>, %56, %cst_33 [1] : vector<128x128xf32> to vector<128xf32>
    %58 = vector.shape_cast %57 : vector<128xf32> to vector<128x1xf32>
    %59 = vector.broadcast %58 : vector<128x1xf32> to vector<128x128xf32>
    %60 = arith.subf %56, %59 : vector<128x128xf32>
    %61 = math.exp %60 : vector<128x128xf32>
    %cst_34 = arith.constant dense<0.000000e+00> : vector<128xf32>
    %62 = vector.multi_reduction <add>, %61, %cst_34 [1] : vector<128x128xf32> to vector<128xf32>
    %63 = vector.shape_cast %62 : vector<128xf32> to vector<128x1xf32>
    %64 = tpu.reciprocal %63 {approx = true} : vector<128x1xf32> -> vector<128x1xf32>
    %65 = arith.mulf %63, %64 : vector<128x1xf32>
    %cst_35 = arith.constant 2.000000e+00 : f32
    %66 = vector.broadcast %cst_35 : f32 to vector<128x1xf32>
    %67 = arith.subf %66, %65 : vector<128x1xf32>
    %68 = arith.mulf %64, %67 : vector<128x1xf32>
    %69 = vector.broadcast %68 : vector<128x1xf32> to vector<128x128xf32>
    %70 = arith.mulf %61, %69 : vector<128x128xf32>
    %cst_36 = arith.constant dense<0.000000e+00> : vector<128x32xf32>
    %71 = tpu.matmul %70, %39, %cst_36 {dimension_numbers = #tpu.dot_dimension_numbers<[1], [0], [0], [1], [0, 0, 1, 1], [], []>} : vector<128x128xf32>, vector<128x32xf32>, vector<128x32xf32> -> vector<128x32xf32>
    %cst_37 = arith.constant 0.000000e+00 : f32
    %72 = vector.broadcast %cst_37 : f32 to vector<128x32xf32>
    %73 = arith.maximumf %71, %72 : vector<128x32xf32>
    %c0_38 = arith.constant 0 : index
    %c0_39 = arith.constant 0 : index
    %74 = vector.load %arg9[%c0_38, %c0_39] : memref<32x64xf32, #tpu.memory_space<vmem>>, vector<32x64xf32>
    %cst_40 = arith.constant dense<0.000000e+00> : vector<128x64xf32>
    %75 = tpu.matmul %73, %74, %cst_40 {dimension_numbers = #tpu.dot_dimension_numbers<[1], [0], [0], [1], [0, 0, 1, 1], [], []>} : vector<128x32xf32>, vector<32x64xf32>, vector<128x64xf32> -> vector<128x64xf32>
    %c0_41 = arith.constant 0 : index
    %c0_42 = arith.constant 0 : index
    %76 = vector.load %arg12[%c0_41, %c0_42] : memref<3x64xf32, #tpu.memory_space<vmem>>, vector<1x64xf32>
    %77 = vector.broadcast %76 : vector<1x64xf32> to vector<128x64xf32>
    %78 = arith.addf %75, %77 : vector<128x64xf32>
    %cst_43 = arith.constant 0.000000e+00 : f32
    %79 = vector.broadcast %cst_43 : f32 to vector<128x64xf32>
    %80 = arith.maximumf %78, %79 : vector<128x64xf32>
    %c0_44 = arith.constant 0 : index
    %c0_45 = arith.constant 0 : index
    %81 = vector.load %arg10[%c0_44, %c0_45] : memref<64x64xf32, #tpu.memory_space<vmem>>, vector<64x64xf32>
    %cst_46 = arith.constant dense<0.000000e+00> : vector<128x64xf32>
    %82 = tpu.matmul %80, %81, %cst_46 {dimension_numbers = #tpu.dot_dimension_numbers<[1], [0], [0], [1], [0, 0, 1, 1], [], []>} : vector<128x64xf32>, vector<64x64xf32>, vector<128x64xf32> -> vector<128x64xf32>
    %c1 = arith.constant 1 : index
    %c0_47 = arith.constant 0 : index
    %83 = vector.load %arg12[%c1, %c0_47] : memref<3x64xf32, #tpu.memory_space<vmem>>, vector<1x64xf32>
    %84 = vector.broadcast %83 : vector<1x64xf32> to vector<128x64xf32>
    %85 = arith.addf %82, %84 : vector<128x64xf32>
    %cst_48 = arith.constant 0.000000e+00 : f32
    %86 = vector.broadcast %cst_48 : f32 to vector<128x64xf32>
    %87 = arith.maximumf %85, %86 : vector<128x64xf32>
    %c0_49 = arith.constant 0 : index
    %c0_50 = arith.constant 0 : index
    %88 = vector.load %arg11[%c0_49, %c0_50] : memref<1x64xf32, #tpu.memory_space<vmem>>, vector<1x64xf32>
    %89 = tpu.transpose %87, [1, 0] : vector<128x64xf32> -> vector<64x128xf32>
    %cst_51 = arith.constant dense<0.000000e+00> : vector<1x128xf32>
    %90 = tpu.matmul %88, %89, %cst_51 {dimension_numbers = #tpu.dot_dimension_numbers<[1], [0], [0], [1], [0, 0, 1, 1], [], []>} : vector<1x64xf32>, vector<64x128xf32>, vector<1x128xf32> -> vector<1x128xf32>
    %c2 = arith.constant 2 : index
    %c0_52 = arith.constant 0 : index
    %91 = vector.load %arg12[%c2, %c0_52] : memref<3x64xf32, #tpu.memory_space<vmem>>, vector<1x1xf32>
    %92 = vector.broadcast %91 : vector<1x1xf32> to vector<1x128xf32>
    %93 = arith.addf %90, %92 : vector<1x128xf32>
    %94 = vector.shape_cast %93 : vector<1x128xf32> to vector<1x1x128xf32>
    %c0_53 = arith.constant 0 : index
    %c0_54 = arith.constant 0 : index
    %c0_55 = arith.constant 0 : index
    %95 = vector.load %arg13[%c0_53, %c0_54, %c0_55] : memref<1x1x128xf32, #tpu.memory_space<vmem>>, vector<1x1x128xf32>
    tpu.vector_store %arg13[%c0_53, %c0_54, %c0_55], %94 {strides = array<i32>} : memref<1x1x128xf32, #tpu.memory_space<vmem>>, vector<1x1x128xf32>,
    return
  }
  func.func @transform_0(%arg0: i32) -> (i32, i32) {
    %c0_i32 = arith.constant 0 : i32
    %c0_i32_0 = arith.constant 0 : i32
    return %arg0, %c0_i32 : i32, i32
  }
  func.func @transform_1(%arg0: i32) -> (i32, i32) {
    %c0_i32 = arith.constant 0 : i32
    %c0_i32_0 = arith.constant 0 : i32
    return %arg0, %c0_i32 : i32, i32
  }
  func.func @transform_2(%arg0: i32) -> (i32, i32) {
    %c0_i32 = arith.constant 0 : i32
    %c0_i32_0 = arith.constant 0 : i32
    %c0_i32_1 = arith.constant 0 : i32
    return %c0_i32, %c0_i32_0 : i32, i32
  }
  func.func @transform_3(%arg0: i32) -> (i32, i32) {
    %c0_i32 = arith.constant 0 : i32
    %c0_i32_0 = arith.constant 0 : i32
    %c0_i32_1 = arith.constant 0 : i32
    return %c0_i32, %c0_i32_0 : i32, i32
  }
  func.func @transform_4(%arg0: i32) -> (i32, i32) {
    %c0_i32 = arith.constant 0 : i32
    %c0_i32_0 = arith.constant 0 : i32
    %c0_i32_1 = arith.constant 0 : i32
    return %c0_i32, %c0_i32_0 : i32, i32
  }
  func.func @transform_5(%arg0: i32) -> (i32, i32) {
    %c0_i32 = arith.constant 0 : i32
    %c0_i32_0 = arith.constant 0 : i32
    %c0_i32_1 = arith.constant 0 : i32
    return %c0_i32, %c0_i32_0 : i32, i32
  }
  func.func @transform_6(%arg0: i32) -> (i32, i32) {
    %c0_i32 = arith.constant 0 : i32
    %c0_i32_0 = arith.constant 0 : i32
    %c0_i32_1 = arith.constant 0 : i32
    return %c0_i32, %c0_i32_0 : i32, i32
  }
  func.func @transform_7(%arg0: i32) -> (i32, i32) {
    %c0_i32 = arith.constant 0 : i32
    %c0_i32_0 = arith.constant 0 : i32
    %c0_i32_1 = arith.constant 0 : i32
    return %c0_i32, %c0_i32_0 : i32, i32
  }
  func.func @transform_8(%arg0: i32) -> (i32, i32) {
    %c0_i32 = arith.constant 0 : i32
    %c0_i32_0 = arith.constant 0 : i32
    %c0_i32_1 = arith.constant 0 : i32
    return %c0_i32, %c0_i32_0 : i32, i32
  }
  func.func @transform_9(%arg0: i32) -> (i32, i32) {
    %c0_i32 = arith.constant 0 : i32
    %c0_i32_0 = arith.constant 0 : i32
    %c0_i32_1 = arith.constant 0 : i32
    return %c0_i32, %c0_i32_0 : i32, i32
  }
  func.func @transform_10(%arg0: i32) -> (i32, i32) {
    %c0_i32 = arith.constant 0 : i32
    %c0_i32_0 = arith.constant 0 : i32
    %c0_i32_1 = arith.constant 0 : i32
    return %c0_i32, %c0_i32_0 : i32, i32
  }
  func.func @transform_11(%arg0: i32) -> (i32, i32) {
    %c0_i32 = arith.constant 0 : i32
    %c0_i32_0 = arith.constant 0 : i32
    %c0_i32_1 = arith.constant 0 : i32
    return %c0_i32, %c0_i32_0 : i32, i32
  }
  func.func @transform_12(%arg0: i32) -> (i32, i32, i32) {
    %c0_i32 = arith.constant 0 : i32
    %c0_i32_0 = arith.constant 0 : i32
    %c0_i32_1 = arith.constant 0 : i32
    return %arg0, %c0_i32, %c0_i32_0 : i32, i32, i32
  }
}

</mosaic_0001>

<bundles_post_ra>
// kernel: tpu_custom_call.1
= control target key start
LH: loop header
LB: loop body
LE: loop exit
PB: predicated region body
PF: predicated region fallthrough
CT: control target
= control target key end

     0   :  { %s5345_s0 = inlined_call_operand.vmem [shape: f32[256,16], index: 0, kind: input, shape index: {}]   ;;  %s5346_s1 = inlined_call_operand.vmem [shape: f32[256,128], index: 1, kind: input, shape index: {}]   ;;  %s5347_s2 = inlined_call_operand.vmem [shape: f32[16,64], index: 2, kind: input, shape index: {}]   ;;  %s5348_s3 = inlined_call_operand.vmem [shape: f32[64,1], index: 3, kind: input, shape index: {}]   ;;  %s5349_s4 = inlined_call_operand.vmem [shape: f32[1,64], index: 4, kind: input, shape index: {}]   ;;  %s5350_s5 = inlined_call_operand.vmem [shape: f32[64,32], index: 5, kind: input, shape index: {}]   ;;  %s5351_s6 = inlined_call_operand.vmem [shape: f32[32,1], index: 6, kind: input, shape index: {}]   ;;  %s5352_s7 = inlined_call_operand.vmem [shape: f32[1,32], index: 7, kind: input, shape index: {}]   ;;  %s5353_s8 = inlined_call_operand.vmem [shape: f32[32,64], index: 8, kind: input, shape index: {}]   ;;  %s5354_s9 = inlined_call_operand.vmem [shape: f32[64,64], index: 9, kind: input, shape index: {}]   ;;  %s5355_s10 = inlined_call_operand.vmem [shape: f32[1,64], index: 10, kind: input, shape index: {}]   ;;  %s5356_s11 = inlined_call_operand.vmem [shape: f32[3,64], index: 11, kind: input, shape index: {}]   ;;  %s5357_s12 = inlined_call_operand.hbm [shape: f32[2,1,128], index: 12, kind: output, shape index: {}]  }
   0x1   :  { %5365 = sst [smem:[#allocation5_spill]] %s5345_s0 }
   0x2   :  { %5366 = sst [smem:[#allocation6_spill]] %s5346_s1 }
   0x3   :  { %17 = vsyncpa [#allocation3], 0 }
   0x4   :  { %19 = vsyncpa [#allocation3 + $0x1], 0  ;;  %s4480_s21 = smov 0   ;;  %s4482_s22 = smov 0  }
   0x5   :  { %s4484_s23 = smov 0   ;;  %s4486_s24 = smov 0  }
   0x6 LB: > { %s3110_s25 = sadd.s32 4294967295, %s4408_s24   ;;  %s3111_s26 = sadd.s32 4294967294, %s4408_s24   ;;  %s4408_s24 = sphi %s4486_s24, %s5401_s24   ;;  %s4404_s23 = sphi %s4484_s23, %s5400_s23   ;;  %s4400_s22 = sphi %s4482_s22, %s5399_s22   ;;  %s4396_s21 = sphi %s4480_s21, %s5398_s21  }
   0x7   : > { %s4503_s27 = sadd.s32 1, %s4408_s24   ;;  %s294_s28 = sadd.s32 1, %s4404_s23 }
   0x8   : > { %s291_s29 = ssub.s32 %s4408_s24, %s4503_s27  ;;  %p304_p0 = scmp.ne.s32.totalorder %s4404_s23, %s4400_s22 }
   0x9   : > { %p292_p1 = scmp.eq.s32.totalorder %s291_s29, 0  ;;  %p305_p2 = scmp.eq.s32.totalorder %s3110_s25, 1 }
   0xa   : > { %p310_p3 = scmp.ne.s32.totalorder %s4400_s22, %s4396_s21  ;;  %p311_p4 = scmp.eq.s32.totalorder %s3111_s26, 1 }
   0xb   : > { %s4513_s30 = scalar_select %p292_p1, %s4404_s23, %s294_s28  }
   0xc   : > { %p4515_p5 = por %p305_p2, %p304_p0  ;;  %p4519_p6 = por %p311_p4, %p310_p3 }
   0xd   : > { %p3114_p7 = scmp.ge.s32.totalorder %s4408_s24, 1  ;;  %p377_p8 = scmp.lt.s32.totalorder %s4408_s24, 3 }
   0xf   : > { %p378_p9 = pnand %p3114_p7, %p377_p8 }
  0x10   : > { %v467_v0 = vld [vmem:[%s5347_s2] sm:$0xff] (!%p378_p9)  ;;  %v468_v1 = vld [vmem:[%s5347_s2 + $0x8] sm:$0xff] (!%p378_p9)  ;;  %s4531_s19 = sshll.u32 (!%p378_p9), %s3110_s25, 4  ;;  %v665_v5 = vld [vmem:[%s5348_s3 + $0x10] sm:$0xff] (!%p378_p9)  ;;  %vm469_vm0 = vcmask (!%p378_p9), 130048   ;;  %s5369_s0 = sld [smem:[#allocation5_spill]] (!%p378_p9) }
  0x11   : > { %381 = sbr.rel (%p378_p9) target bundleno = 2955 (0xb8b), region = 68  ;;  %v663_v2 = vld [vmem:[%s5348_s3] sm:$0xff] (!%p378_p9)  ;;  %v3945_v3 = vpack.c.bf16 (!%p378_p9), %v468_v1, %v467_v0  ;;  %p424_p10 = scmp.lt.s32.totalorder (!%p378_p9), %s4531_s19, 31  ;;  %v664_v4 = vld [vmem:[%s5348_s3 + $0x8] sm:$0xff] (!%p378_p9)  ;;  %v666_v6 = vld [vmem:[%s5348_s3 + $0x18] sm:$0xff] (!%p378_p9)  ;;  %v4410_v31 = vmov (!%p378_p9), 0.0|0.0  }
  0x12   : > { %v3949_v7 = vpack.c.bf16 (!%p378_p9), %v664_v4, %v663_v2  ;;  %v3953_v8 = vpack.c.bf16 (!%p378_p9), %v666_v6, %v665_v5  ;;  %v667_v9 = vld [vmem:[%s5348_s3 + $0x20] sm:$0xff] (!%p378_p9)  ;;  %v668_v10 = vld [vmem:[%s5348_s3 + $0x28] sm:$0xff] (!%p378_p9)  ;;  %v669_v12 = vld [vmem:[%s5348_s3 + $0x30] sm:$0xff] (!%p378_p9)  ;;  %vm4411_vm1 = vmmov (!%p378_p9), 0   ;;  %v4412_v32 = vmov (!%p378_p9), 0.0   ;;  %s5372_s1 = sld [smem:[#allocation6_spill]] (!%p378_p9) }
  0x13   : > { %3946 = vmatprep.subr.bf16.mxu0 (!%p378_p9), %v3945_v3  ;;  %v3957_v11 = vpack.c.bf16 (!%p378_p9), %v668_v10, %v667_v9  ;;  %v670_v13 = vld [vmem:[%s5348_s3 + $0x38] sm:$0xff] (!%p378_p9)  ;;  %vm5364_vm2 = vcmask (!%p378_p9), 523264   ;;  %v671_v58 = vld [vmem:[%s5349_s4] sm:$0x1] (!%p378_p9)  ;;  %v4413_v59 = vmov (!%p378_p9), 0  }
  0x14   : > { %3948 = vmatpush3.bf16.msra.mxu0 (!%p378_p9), %v3945_v3  ;;  %3950 = vmatprep.subr.bf16.mxu1 (!%p378_p9), %v3949_v7  ;;  %v3961_v18 = vpack.c.bf16 (!%p378_p9), %v670_v13, %v669_v12  ;;  %vm4606_vm3 = vmpackc.low (!%p378_p9), %vm5364_vm2, %vm5364_vm2 }
  0x15   : > { %3952 = vmatpush3.bf16.msra.mxu1 (!%p378_p9), %v3949_v7  ;;  %3965 = vmatprep.subr.bf16.mxu0 (!%p378_p9), %v4410_v31 }
  0x16   : > { %3954 = vmatprep.subr.bf16.mxu1 (!%p378_p9), %v3953_v8  ;;  %4216 = vset.pattern.permute.xlu0 (!%p378_p9), %v4413_v59 }
  0x17   : > { %4217 = vset.pattern.permute.xlu1 (!%p378_p9), %v4413_v59 }
  0x18   : > { %s4547_s25 = scalar_select %p424_p10, %s4531_s19, 31 }
  0x19   : > { %3956 = vmatpush3.bf16.msra.mxu1 %v3953_v8 }
  0x1a   : > { %s3116_s15 = sshll.u32 %s4547_s25, 3  ;;  %3958 = vmatprep.subr.bf16.mxu1 %v3957_v11  ;;  %s4414_s25 = smov [#allocation2]  }
  0x1b   : > { %s4561_s18 = scalar_lea.vmem %s5369_s0, %s3116_s15  ;;  %s4665_s26 = scalar_lea.vmem %s5372_s1, %s3116_s15 }
  0x1c   : > { %v451_v14 = vld [vmem:[%s4561_s18] sm:$0xff]  ;;  %v452_v15 = vld [vmem:[%s4561_s18 + $0x8] sm:$0xff]  ;;  %v453_v16 = vld [vmem:[%s4561_s18 + $0x10] sm:$0xff]  ;;  %s421_s0 = sand.u32 1, %s4400_s22   ;;  %s4350_s15 = sshll.u32 %s4414_s25, 4  ;;  %s4351_s15 = int_to_ptr.vmem [resolvable:$false] %s4350_s15 }
  0x1d   : > { %3520 = vmatprep.mubr.msk.f32.mxu0 %vm469_vm0, %v451_v14  ;;  %v454_v17 = vld [vmem:[%s4561_s18 + $0x18] sm:$0xff]  ;;  %v455_v19 = vld [vmem:[%s4561_s18 + $0x20] sm:$0xff]  ;;  %3960 = vmatpush3.bf16.msra.mxu1 %v3957_v11  ;;  %v456_v20 = vld [vmem:[%s4561_s18 + $0x28] sm:$0xff]  ;;  %v1019_v14 = vlaneseq  ;;  %s422_s28 = scalar_lea.vmem [#allocation2], %s421_s0  ;;  %s3032_s20 = scalar_lea.sflag [#allocation3], %s421_s0 }
  0x1e   : > { %3521 = vmatmul.mubr.msk.f32.vlgmr.msra.gmra.mrb[0].mxu0 %vm469_vm0, %v452_v15  ;;  %3962 = vmatprep.subr.bf16.mxu1 %v3961_v18  ;;  %v457_v21 = vld [vmem:[%s4561_s18 + $0x30] sm:$0xff]  ;;  %v458_v22 = vld [vmem:[%s4561_s18 + $0x38] sm:$0xff]  ;;  %v459_v23 = vld [vmem:[%s4561_s18 + $0x40] sm:$0xff]  ;;  %s3044_s29 = sshll.u32 %s422_s28, 4  ;;  %s4352_s1 = scalar_lea.vmem %s4351_s15, 32  ;;  %s5305_s29 = int_to_ptr.vmem [resolvable:$true] %s3044_s29 }
  0x1f   : > { %3523 = vmatprep.mubr.msk.f32.mxu0 %vm469_vm0, %v453_v16  ;;  %v460_v24 = vld [vmem:[%s4561_s18 + $0x48] sm:$0xff]  ;;  %v461_v25 = vld [vmem:[%s4561_s18 + $0x50] sm:$0xff]  ;;  %v462_v26 = vld [vmem:[%s4561_s18 + $0x58] sm:$0xff]  ;;  %v4653_v15 = vshrl.u32 %v1019_v14, 7  ;;  %p4353_p0 = scmp.lt.s32.totalorder %s5305_s29, %s4351_s15 }
  0x20   : > { %v463_v27 = vld [vmem:[%s4561_s18 + $0x60] sm:$0xff]  ;;  %v464_v28 = vld [vmem:[%s4561_s18 + $0x68] sm:$0xff]  ;;  %v465_v29 = vld [vmem:[%s4561_s18 + $0x70] sm:$0xff] }
  0x21   : > { %3964 = vmatpush3.bf16.msra.mxu1 %v3961_v18  ;;  %v466_v30 = vld [vmem:[%s4561_s18 + $0x78] sm:$0xff]  ;;  %v1021_v16 = vsub.s32 0, %v4653_v15  ;;  %s5303_s18 = scalar_lea.hbm %s5357_s12, %s4531_s19 }
  0x22   : > { %3524 = vmatmul.mubr.msk.f32.gmra.mrb[2].mxu0 %vm469_vm0, %v454_v17 }
  0x23   : > { %3526 = vmatprep.mubr.msk.f32.mxu0 %vm469_vm0, %v455_v19  ;;  %v4668_v19 = vld [vmem:[%s4665_s26] sm:$0xff] }
  0x24   : > { %vm1087_vm5 = vcmp.gt.f32.partialorder %v4668_v19, 0.0 }
  0x26   : > { %3527 = vmatmul.mubr.msk.f32.gmra.mrb[4].mxu0 %vm469_vm0, %v456_v20 }
  0x27   : > { %3529 = vmatprep.mubr.msk.f32.mxu0 %vm469_vm0, %v457_v21 }
  0x2a   : > { %3530 = vmatmul.mubr.msk.f32.gmra.mrb[6].mxu0 %vm469_vm0, %v458_v22  ;;  %v4673_v22 = vld [vmem:[%s4665_s26 + $0x8] sm:$0xff] }
  0x2b   : > { %3532 = vmatprep.mubr.msk.f32.mxu0 %vm469_vm0, %v459_v23  ;;  %v4676_v23 = vld [vmem:[%s4665_s26 + $0x10] sm:$0xff]  ;;  %vm1088_vm6 = vcmp.gt.f32.partialorder %v4673_v22, 0.0 }
  0x2c   : > { %vm1089_vm7 = vcmp.gt.f32.partialorder %v4676_v23, 0.0 }
  0x2e   : > { %3533 = vmatmul.mubr.msk.f32.gmra.mrb[8].mxu0 %vm469_vm0, %v460_v24 }
  0x2f   : > { %3535 = vmatprep.mubr.msk.f32.mxu0 %vm469_vm0, %v461_v25 }
  0x32   : > { %3536 = vmatmul.mubr.msk.f32.gmra.mrb[10].mxu0 %vm469_vm0, %v462_v26 }
  0x33   : > { %3538 = vmatprep.mubr.msk.f32.mxu0 %vm469_vm0, %v463_v27 }
  0x36   : > { %3539 = vmatmul.mubr.msk.f32.gmra.mrb[12].mxu0 %vm469_vm0, %v464_v28 }
  0x37   : > { %3541 = vmatprep.mubr.msk.f32.mxu0 %vm469_vm0, %v465_v29  ;;  %v4681_v29 = vld [vmem:[%s4665_s26 + $0x20] sm:$0xff] }
  0x38   : > { %vm1091_vm10 = vcmp.gt.f32.partialorder %v4681_v29, 0.0 }
  0x3a   : > { %3542 = vmatmul.mubr.msk.f32.gmra.mrb[14].mxu0 %vm469_vm0, %v466_v30  ;;  %v4684_v30 = vld [vmem:[%s4665_s26 + $0x18] sm:$0xff] }
  0x3b   : > { %3616 = vmatprep.mubr.msk.f32.mxu0 %vm4411_vm1, %v4412_v32  ;;  %vm1090_vm11 = vcmp.gt.f32.partialorder %v4684_v30, 0.0 }
  0xf1   : > { %v3522_v33 = vpop.f32.mrb[0].mxu0 }
  0xf2   : > { %v584_v34 = vpop.f32.mrb[1].mxu0 }
  0xf3   : > { %v3966_v36 = vpack.c.bf16 %v3522_v33, %v584_v34  ;;  %3560 = vmatprep.mubr.msk.f32.mxu1 %vm5364_vm2, %v584_v34 }
  0xf4   : > { %3561 = vmatmul.mubr.msk.f32.vlgmr.msra.gmra.mrb[0].mxu1 %vm5364_vm2, %v3522_v33 }
  0xf5   : > { %v3525_v37 = vpop.f32.mrb[2].mxu0  ;;  %3968 = vmatpush3.bf16.xpose.msk.msra.mxu0 %vm4606_vm3, %v3966_v36  ;;  %3998 = vmatprep.subr.bf16.mxu1 %v3966_v36 }
  0xf6   : > { %v594_v38 = vpop.f32.mrb[3].mxu0  ;;  %4000 = vmatpush3.bf16.msra.mxu1 %v3966_v36  ;;  %3969 = vmatprep.subr.bf16.mxu0 %v4410_v31 }
  0xf7   : > { %v3970_v39 = vpack.c.bf16 %v3525_v37, %v594_v38  ;;  %3563 = vmatprep.mubr.msk.f32.mxu1 %vm5364_vm2, %v594_v38 }
  0xf8   : > { %3564 = vmatmul.mubr.msk.f32.gmra.mrb[2].mxu1 %vm5364_vm2, %v3525_v37 }
  0xf9   : > { %v3528_v40 = vpop.f32.mrb[4].mxu0  ;;  %4002 = vmatprep.subr.bf16.mxu1 %v3970_v39 }
  0xfa   : > { %v604_v41 = vpop.f32.mrb[5].mxu0  ;;  %4004 = vmatpush3.bf16.msra.mxu1 %v3970_v39 }
  0xfb   : > { %v3974_v42 = vpack.c.bf16 %v3528_v40, %v604_v41  ;;  %3566 = vmatprep.mubr.msk.f32.mxu1 %vm5364_vm2, %v604_v41 }
  0xfc   : > { %3567 = vmatmul.mubr.msk.f32.gmra.mrb[4].mxu1 %vm5364_vm2, %v3528_v40 }
  0xfd   : > { %v3531_v43 = vpop.f32.mrb[6].mxu0  ;;  %3972 = vmatpush3.bf16.xpose.msk.msra.mxu0 %vm4606_vm3, %v3970_v39  ;;  %4006 = vmatprep.subr.bf16.mxu1 %v3974_v42 }
  0xfe   : > { %v614_v44 = vpop.f32.mrb[7].mxu0  ;;  %3973 = vmatprep.subr.bf16.mxu0 %v4410_v31  ;;  %4008 = vmatpush3.bf16.msra.mxu1 %v3974_v42 }
  0xff   : > { %v3978_v45 = vpack.c.bf16 %v3531_v43, %v614_v44  ;;  %3569 = vmatprep.mubr.msk.f32.mxu1 %vm5364_vm2, %v614_v44 }
 0x100   : > { %3570 = vmatmul.mubr.msk.f32.gmra.mrb[6].mxu1 %vm5364_vm2, %v3531_v43 }
 0x101   : > { %v3534_v46 = vpop.f32.mrb[8].mxu0  ;;  %4010 = vmatprep.subr.bf16.mxu1 %v3978_v45 }
 0x102   : > { %v624_v47 = vpop.f32.mrb[9].mxu0  ;;  %4012 = vmatpush3.bf16.msra.mxu1 %v3978_v45 }
 0x103   : > { %v3982_v48 = vpack.c.bf16 %v3534_v46, %v624_v47  ;;  %3572 = vmatprep.mubr.msk.f32.mxu1 %vm5364_vm2, %v624_v47 }
 0x104   : > { %3573 = vmatmul.mubr.msk.f32.gmra.mrb[8].mxu1 %vm5364_vm2, %v3534_v46  ;;  %v4709_v46 = vld [vmem:[%s4665_s26 + $0x28] sm:$0xff] }
 0x105   : > { %v3537_v49 = vpop.f32.mrb[10].mxu0  ;;  %3976 = vmatpush3.bf16.xpose.msk.msra.mxu0 %vm4606_vm3, %v3974_v42  ;;  %4014 = vmatprep.subr.bf16.mxu1 %v3982_v48  ;;  %vm1092_vm15 = vcmp.gt.f32.partialorder %v4709_v46, 0.0 }
 0x106   : > { %v634_v50 = vpop.f32.mrb[11].mxu0  ;;  %3977 = vmatprep.subr.bf16.mxu0 %v4410_v31  ;;  %4016 = vmatpush3.bf16.msra.mxu1 %v3982_v48 }
 0x107   : > { %v3986_v51 = vpack.c.bf16 %v3537_v49, %v634_v50  ;;  %3575 = vmatprep.mubr.msk.f32.mxu1 %vm5364_vm2, %v634_v50 }
 0x108   : > { %3576 = vmatmul.mubr.msk.f32.gmra.mrb[10].mxu1 %vm5364_vm2, %v3537_v49 }
 0x109   : > { %v3540_v52 = vpop.f32.mrb[12].mxu0  ;;  %4018 = vmatprep.subr.bf16.mxu1 %v3986_v51 }
 0x10a   : > { %v644_v53 = vpop.f32.mrb[13].mxu0  ;;  %4020 = vmatpush3.bf16.msra.mxu1 %v3986_v51 }
 0x10b   : > { %v3990_v54 = vpack.c.bf16 %v3540_v52, %v644_v53  ;;  %3578 = vmatprep.mubr.msk.f32.mxu1 %vm5364_vm2, %v644_v53 }
 0x10c   : > { %3579 = vmatmul.mubr.msk.f32.gmra.mrb[12].mxu1 %vm5364_vm2, %v3540_v52 }
 0x10d   : > { %v3543_v55 = vpop.f32.mrb[14].mxu0  ;;  %3980 = vmatpush3.bf16.xpose.msk.msra.mxu0 %vm4606_vm3, %v3978_v45  ;;  %4022 = vmatprep.subr.bf16.mxu1 %v3990_v54  ;;  %v4706_v45 = vld [vmem:[%s4665_s26 + $0x30] sm:$0xff] }
 0x10e   : > { %v654_v56 = vpop.f32.mrb[15].mxu0  ;;  %3981 = vmatprep.subr.bf16.mxu0 %v4410_v31  ;;  %4024 = vmatpush3.bf16.msra.mxu1 %v3990_v54  ;;  %vm1093_vm14 = vcmp.gt.f32.partialorder %v4706_v45, 0.0 }
 0x10f   : > { %v3994_v57 = vpack.c.bf16 %v3543_v55, %v654_v56  ;;  %3581 = vmatprep.mubr.msk.f32.mxu1 %vm5364_vm2, %v654_v56  ;;  %v4719_v56 = vld [vmem:[%s4665_s26 + $0x38] sm:$0xff] }
 0x110   : > { %3582 = vmatmul.mubr.msk.f32.gmra.mrb[14].mxu1 %vm5364_vm2, %v3543_v55  ;;  %v4716_v55 = vld [vmem:[%s4665_s26 + $0x40] sm:$0xff] }
 0x111   : > { %4026 = vmatprep.subr.bf16.mxu1 %v3994_v57 }
 0x112   : > { %4028 = vmatpush3.bf16.msra.mxu1 %v3994_v57 }
 0x115   : > { %3984 = vmatpush3.bf16.xpose.msk.msra.mxu0 %vm4606_vm3, %v3982_v48 }
 0x116   : > { %3985 = vmatprep.subr.bf16.mxu0 %v4410_v31 }
 0x11d   : > { %3988 = vmatpush3.bf16.xpose.msk.msra.mxu0 %vm4606_vm3, %v3986_v51 }
 0x11e   : > { %3989 = vmatprep.subr.bf16.mxu0 %v4410_v31 }
 0x125   : > { %3992 = vmatpush3.bf16.xpose.msk.msra.mxu0 %vm4606_vm3, %v3990_v54 }
 0x126   : > { %3993 = vmatprep.subr.bf16.mxu0 %v4410_v31 }
 0x12d   : > { %3996 = vmatpush3.bf16.xpose.msk.msra.mxu0 %vm4606_vm3, %v3994_v57 }
 0x134   : > { %3617 = vmatmul.mubr.msk.f32.vlgmr.msra.gmra.mrb[16].mxu0 %vm5364_vm2, %v671_v58 }
 0x1c7   : > { %v3562_v60 = vpop.f32.mrb[0].mxu1 }
 0x1c8   : > { %v787_v61 = vpop.f32.mrb[1].mxu1 }
 0x1c9   : > { %941 = vperm.xlu0 %4216, %v787_v61  }
 0x1cb   : > { %v3565_v62 = vpop.f32.mrb[2].mxu1 }
 0x1cc   : > { %v797_v63 = vpop.f32.mrb[3].mxu1 }
 0x1cd   : > { %946 = vperm.xlu0 %4216, %v3562_v60   ;;  %951 = vperm.xlu1 %4217, %v797_v63  }
 0x1cf   : > { %v3568_v0 = vpop.f32.mrb[4].mxu1 }
 0x1d0   : > { %v807_v1 = vpop.f32.mrb[5].mxu1 }
 0x1d1   : > { %956 = vperm.xlu1 %4217, %v3565_v62   ;;  %961 = vperm.xlu0 %4216, %v807_v1  }
 0x1d3   : > { %v3571_v2 = vpop.f32.mrb[6].mxu1 }
 0x1d4   : > { %v817_v3 = vpop.f32.mrb[7].mxu1 }
 0x1d5   : > { %966 = vperm.xlu1 %4217, %v3568_v0   ;;  %971 = vperm.xlu0 %4216, %v817_v3  }
 0x1d7   : > { %v3574_v4 = vpop.f32.mrb[8].mxu1 }
 0x1d8   : > { %v827_v5 = vpop.f32.mrb[9].mxu1 }
 0x1d9   : > { %976 = vperm.xlu1 %4217, %v3571_v2   ;;  %981 = vperm.xlu0 %4216, %v827_v5   ;;  %v4746_v5 = vld [vmem:[%s4665_s26 + $0x50] sm:$0xff] }
 0x1db   : > { %v3577_v6 = vpop.f32.mrb[10].mxu1 }
 0x1dc   : > { %v837_v7 = vpop.f32.mrb[11].mxu1 }
 0x1dd   : > { %986 = vperm.xlu1 %4217, %v3574_v4   ;;  %991 = vperm.xlu0 %4216, %v837_v7  }
 0x1df   : > { %v3580_v8 = vpop.f32.mrb[12].mxu1 }
 0x1e0   : > { %v847_v9 = vpop.f32.mrb[13].mxu1 }
 0x1e1   : > { %996 = vperm.xlu1 %4217, %v3577_v6   ;;  %1001 = vperm.xlu0 %4216, %v847_v9   ;;  %v4749_v6 = vld [vmem:[%s4665_s26 + $0x48] sm:$0xff] }
 0x1e3   : > { %v3583_v10 = vpop.f32.mrb[14].mxu1 }
 0x1e4   : > { %v857_v11 = vpop.f32.mrb[15].mxu1 }
 0x1e5   : > { %1006 = vperm.xlu1 %4217, %v3580_v8   ;;  %1011 = vperm.xlu0 %4216, %v857_v11  }
 0x1e9   : > { %1016 = vperm.xlu1 %4217, %v3583_v10  }
 0x207   : > { %v935_v12 = vpop.f32.mrb[16].mxu0 }
 0x208   : > { %v3618_v13 = vpop.f32.mrb[17].mxu0  ;;  %v4658_v17 = vrot.slane %v935_v12, %v1021_v16 }
 0x248   : > { %v942_v18 = vpop.permute.xlu0 %941 }
 0x249   : > { %v1023_v20 = vadd.f32 %v4658_v17, %v942_v18  ;;  %v4756_v18 = vld [vmem:[%s4665_s26 + $0x60] sm:$0xff] }
 0x24b   : > { %v1055_v21 = vmul.f32 0.2, %v1023_v20  ;;  %vm1039_vm4 = vcmp.gt.f32.partialorder %v1023_v20, 0.0 }
 0x24c   : > { %v947_v24 = vpop.permute.xlu0 %946  ;;  %v952_v25 = vpop.permute.xlu1 %951 }
 0x24d   : > { %v1024_v26 = vadd.f32 %v4658_v17, %v947_v24  ;;  %v1025_v27 = vadd.f32 %v4658_v17, %v952_v25  ;;  %v1071_v28 = vsel %vm1039_vm4, %v1023_v20, %v1055_v21  ;;  %v4759_v20 = vld [vmem:[%s4665_s26 + $0x58] sm:$0xff] }
 0x24e   : > { %v4688_v33 = vsel %vm1087_vm5, %v1071_v28, -9e+15 }
 0x24f   : > { %v1056_v34 = vmul.f32 0.2, %v1024_v26  ;;  %v1057_v36 = vmul.f32 0.2, %v1025_v27  ;;  %1119 = vmax.xlane.f32.xlu0 %v4688_v33  ;;  %vm1040_vm8 = vcmp.gt.f32.partialorder %v1024_v26, 0.0  ;;  %vm1041_vm9 = vcmp.gt.f32.partialorder %v1025_v27, 0.0 }
 0x250   : > { %v957_v37 = vpop.permute.xlu1 %956  ;;  %v962_v38 = vpop.permute.xlu0 %961 }
 0x251   : > { %v1026_v39 = vadd.f32 %v4658_v17, %v957_v37  ;;  %v1027_v40 = vadd.f32 %v4658_v17, %v962_v38  ;;  %v1072_v41 = vsel %vm1040_vm8, %v1024_v26, %v1056_v34  ;;  %v1073_v42 = vsel %vm1041_vm9, %v1025_v27, %v1057_v36 }
 0x252   : > { %v4699_v43 = vsel %vm1088_vm6, %v1072_v41, -9e+15  ;;  %v4703_v44 = vsel %vm1089_vm7, %v1073_v42, -9e+15  ;;  %vm5358_vm8 = vcmp.gt.f32.partialorder %v4716_v55, 0.0  ;;  %vm5359_vm9 = vcmp.gt.f32.partialorder %v4719_v56, 0.0 }
 0x253   : > { %v1058_v47 = vmul.f32 0.2, %v1026_v39  ;;  %v1059_v48 = vmul.f32 0.2, %v1027_v40  ;;  %1121 = vmax.xlane.f32.xlu1 %v4699_v43  ;;  %1123 = vmax.xlane.f32.xlu0 %v4703_v44  ;;  %vm1043_vm12 = vcmp.gt.f32.partialorder %v1027_v40, 0.0  ;;  %vm1042_vm13 = vcmp.gt.f32.partialorder %v1026_v39, 0.0 }
 0x254   : > { %v967_v49 = vpop.permute.xlu1 %966  ;;  %v972_v50 = vpop.permute.xlu0 %971  ;;  %v4786_v41 = vld [vmem:[%s4665_s26 + $0x68] sm:$0xff]  ;;  %v4789_v42 = vld [vmem:[%s4665_s26 + $0x70] sm:$0xff] }
 0x255   : > { %v1028_v51 = vadd.f32 %v4658_v17, %v967_v49  ;;  %v1029_v52 = vadd.f32 %v4658_v17, %v972_v50  ;;  %v1075_v53 = vsel %vm1043_vm12, %v1027_v40, %v1059_v48  ;;  %v1074_v54 = vsel %vm1042_vm13, %v1026_v39, %v1058_v47 }
 0x256   : > { %v4723_v57 = vsel %vm1091_vm10, %v1075_v53, -9e+15  ;;  %v4727_v58 = vsel %vm1090_vm11, %v1074_v54, -9e+15 }
 0x257   : > { %v1060_v59 = vmul.f32 0.2, %v1028_v51  ;;  %v1061_v60 = vmul.f32 0.2, %v1029_v52  ;;  %1127 = vmax.xlane.f32.xlu1 %v4723_v57  ;;  %1125 = vmax.xlane.f32.xlu0 %v4727_v58  ;;  %vm1045_vm0 = vcmp.gt.f32.partialorder %v1029_v52, 0.0  ;;  %vm1044_vm4 = vcmp.gt.f32.partialorder %v1028_v51, 0.0 }
 0x258   : > { %v977_v61 = vpop.permute.xlu1 %976  ;;  %v982_v62 = vpop.permute.xlu0 %981 }
 0x259   : > { %v1030_v63 = vadd.f32 %v4658_v17, %v977_v61  ;;  %v1031_v0 = vadd.f32 %v4658_v17, %v982_v62  ;;  %v1077_v1 = vsel %vm1045_vm0, %v1029_v52, %v1061_v60  ;;  %v1076_v2 = vsel %vm1044_vm4, %v1028_v51, %v1060_v59 }
 0x25a   : > { %v4739_v3 = vsel %vm1093_vm14, %v1077_v1, -9e+15  ;;  %v4743_v4 = vsel %vm1092_vm15, %v1076_v2, -9e+15  ;;  %vm5361_vm0 = vcmp.gt.f32.partialorder %v4746_v5, 0.0  ;;  %vm5360_vm4 = vcmp.gt.f32.partialorder %v4749_v6, 0.0 }
 0x25b   : > { %v1062_v7 = vmul.f32 0.2, %v1030_v63  ;;  %v1063_v8 = vmul.f32 0.2, %v1031_v0  ;;  %1131 = vmax.xlane.f32.xlu1 %v4739_v3  ;;  %1129 = vmax.xlane.f32.xlu0 %v4743_v4  ;;  %vm1047_vm12 = vcmp.gt.f32.partialorder %v1031_v0, 0.0  ;;  %vm1046_vm13 = vcmp.gt.f32.partialorder %v1030_v63, 0.0 }
 0x25c   : > { %v987_v9 = vpop.permute.xlu1 %986  ;;  %v992_v10 = vpop.permute.xlu0 %991 }
 0x25d   : > { %v1032_v11 = vadd.f32 %v4658_v17, %v987_v9  ;;  %v1033_v12 = vadd.f32 %v4658_v17, %v992_v10  ;;  %v1079_v13 = vsel %vm1047_vm12, %v1031_v0, %v1063_v8  ;;  %v1078_v14 = vsel %vm1046_vm13, %v1030_v63, %v1062_v7  ;;  %v4808_v0 = vld [vmem:[%s4665_s26 + $0x78] sm:$0xff]  ;;  %s4346_s26 = scalar_lea.vmem %s5305_s29, 16 }
 0x25e   : > { %v4763_v21 = vsel %vm5358_vm8, %v1079_v13, -9e+15  ;;  %v4767_v24 = vsel %vm5359_vm9, %v1078_v14, -9e+15  ;;  %vm5363_vm8 = vcmp.gt.f32.partialorder %v4756_v18, 0.0  ;;  %vm5362_vm9 = vcmp.gt.f32.partialorder %v4759_v20, 0.0  ;;  %p4347_p11 = scmp.ne.s32.totalorder %s5305_s29, %s4346_s26  ;;  %p4354_p1 = scmp.lt.s32.totalorder %s4352_s1, %s4346_s26 }
 0x25f   : > { %v1064_v25 = vmul.f32 0.2, %v1032_v11  ;;  %v1065_v26 = vmul.f32 0.2, %v1033_v12  ;;  %1135 = vmax.xlane.f32.xlu1 %v4763_v21  ;;  %1133 = vmax.xlane.f32.xlu0 %v4767_v24  ;;  %vm1049_vm12 = vcmp.gt.f32.partialorder %v1033_v12, 0.0  ;;  %vm1048_vm13 = vcmp.gt.f32.partialorder %v1032_v11, 0.0 }
 0x260   : > { %v997_v27 = vpop.permute.xlu1 %996  ;;  %v1002_v28 = vpop.permute.xlu0 %1001  ;;  %p4348_p12 = pnand %p4347_p11, %p4515_p5  ;;  %p4355_p2 = por %p4354_p1, %p4353_p0 }
 0x261   : > { %v1034_v34 = vadd.f32 %v4658_v17, %v997_v27  ;;  %v1035_v36 = vadd.f32 %v4658_v17, %v1002_v28  ;;  %v1081_v37 = vsel %vm1049_vm12, %v1033_v12, %v1065_v26  ;;  %v1080_v38 = vsel %vm1048_vm13, %v1032_v11, %v1064_v25 }
 0x262   : > { %v4779_v39 = vsel %vm5361_vm0, %v1081_v37, -9e+15  ;;  %v4783_v40 = vsel %vm5360_vm4, %v1080_v38, -9e+15  ;;  %vm1100_vm4 = vcmp.gt.f32.partialorder %v4786_v41, 0.0  ;;  %vm1101_vm0 = vcmp.gt.f32.partialorder %v4789_v42, 0.0  ;;  %p4349_p13 = pneg %p4348_p12 }
 0x263   : > { %v1066_v47 = vmul.f32 0.2, %v1034_v34  ;;  %v1067_v48 = vmul.f32 0.2, %v1035_v36  ;;  %1139 = vmax.xlane.f32.xlu1 %v4779_v39  ;;  %1137 = vmax.xlane.f32.xlu0 %v4783_v40  ;;  %vm1051_vm12 = vcmp.gt.f32.partialorder %v1035_v36, 0.0  ;;  %vm1050_vm13 = vcmp.gt.f32.partialorder %v1034_v34, 0.0 }
 0x264   : > { %v1007_v49 = vpop.permute.xlu1 %1006  ;;  %v1012_v50 = vpop.permute.xlu0 %1011  ;;  %p4356_p3 = pnand %p4355_p2, %p4349_p13 }
 0x265   : > { %v1036_v51 = vadd.f32 %v4658_v17, %v1007_v49  ;;  %v1037_v52 = vadd.f32 %v4658_v17, %v1012_v50  ;;  %v1083_v53 = vsel %vm1051_vm12, %v1035_v36, %v1067_v48  ;;  %v1082_v54 = vsel %vm1050_vm13, %v1034_v34, %v1066_v47 }
 0x266   : > { %v4797_v59 = vsel %vm5363_vm8, %v1083_v53, -9e+15  ;;  %v4801_v60 = vsel %vm5362_vm9, %v1082_v54, -9e+15  ;;  %vm1102_vm8 = vcmp.gt.f32.partialorder %v4808_v0, 0.0 }
 0x267   : > { %v1068_v61 = vmul.f32 0.2, %v1036_v51  ;;  %v1069_v62 = vmul.f32 0.2, %v1037_v52  ;;  %1143 = vmax.xlane.f32.xlu1 %v4797_v59  ;;  %1141 = vmax.xlane.f32.xlu0 %v4801_v60  ;;  %vm1052_vm12 = vcmp.gt.f32.partialorder %v1036_v51, 0.0  ;;  %vm1053_vm13 = vcmp.gt.f32.partialorder %v1037_v52, 0.0 }
 0x268   : > { %v1017_v63 = vpop.permute.xlu1 %1016 }
 0x269   : > { %v1038_v1 = vadd.f32 %v4658_v17, %v1017_v63  ;;  %v1084_v2 = vsel %vm1052_vm12, %v1036_v51, %v1068_v61  ;;  %v1085_v7 = vsel %vm1053_vm13, %v1037_v52, %v1069_v62 }
 0x26a   : > { %v4813_v8 = vsel %vm1100_vm4, %v1084_v2, -9e+15  ;;  %v4817_v9 = vsel %vm1101_vm0, %v1085_v7, -9e+15 }
 0x26b   : > { %v1070_v10 = vmul.f32 0.2, %v1038_v1  ;;  %1145 = vmax.xlane.f32.xlu0 %v4813_v8  ;;  %1147 = vmax.xlane.f32.xlu1 %v4817_v9  ;;  %vm1054_vm9 = vcmp.gt.f32.partialorder %v1038_v1, 0.0 }
 0x26d   : > { %v1086_v11 = vsel %vm1054_vm9, %v1038_v1, %v1070_v10  ;;  %vm1678_vm9 = vcmask 261120  }
 0x26e   : > { %v4824_v17 = vsel %vm1102_vm8, %v1086_v11, -9e+15  ;;  %vm4962_vm12 = vmpackc.low %vm1678_vm9, %vm1678_vm9 }
 0x26f   : > { %1149 = vmax.xlane.f32.xlu0 %v4824_v17 }
 0x2dc   : > { %v1120_v12 = vpop.xlane.xlu0 %1119 }
 0x2dd   : > { %v1151_v13 = vsub.f32 %v4688_v33, %v1120_v12 }
 0x2df   : > { %v1167_v14 = vmul.f32 1.442695, %v1151_v13 }
 0x2e0   : > { %v1122_v25 = vpop.xlane.xlu1 %1121  ;;  %v1124_v26 = vpop.xlane.xlu0 %1123 }
 0x2e1   : > { %4218 = vpow2.f32 %v1167_v14  ;;  %v1152_v27 = vsub.f32 %v4699_v43, %v1122_v25  ;;  %v1153_v28 = vsub.f32 %v4703_v44, %v1124_v26 }
 0x2e3   : > { %v1169_v34 = vmul.f32 1.442695, %v1152_v27  ;;  %v1171_v36 = vmul.f32 1.442695, %v1153_v28 }
 0x2e4   : > { %v1128_v37 = vpop.xlane.xlu1 %1127  ;;  %v1126_v38 = vpop.xlane.xlu0 %1125 }
 0x2e5   : > { %4220 = vpow2.f32 %v1169_v34  ;;  %v1155_v47 = vsub.f32 %v4723_v57, %v1128_v37  ;;  %v1154_v48 = vsub.f32 %v4727_v58, %v1126_v38 }
 0x2e6   : > { %4222 = vpow2.f32 %v1171_v36 }
 0x2e7   : > { %v1175_v49 = vmul.f32 1.442695, %v1155_v47  ;;  %v1173_v33 = vmul.f32 1.442695, %v1154_v48 }
 0x2e8   : > { %v1132_v50 = vpop.xlane.xlu1 %1131  ;;  %v1130_v51 = vpop.xlane.xlu0 %1129 }
 0x2e9   : > { %4224 = vpow2.f32 %v1175_v49  ;;  %v1157_v52 = vsub.f32 %v4739_v3, %v1132_v50  ;;  %v1156_v43 = vsub.f32 %v4743_v4, %v1130_v51 }
 0x2ea   : > { %4226 = vpow2.f32 %v1173_v33 }
 0x2eb   : > { %v4834_v44 = vpop.eup %4218  ;;  %v1179_v53 = vmul.f32 1.442695, %v1157_v52  ;;  %v1177_v54 = vmul.f32 1.442695, %v1156_v43 }
 0x2ec   : > { %v1136_v61 = vpop.xlane.xlu1 %1135  ;;  %1199 = vadd.xlane.f32.xlu1 %v4834_v44  ;;  %v1134_v57 = vpop.xlane.xlu0 %1133 }
 0x2ed   : > { %4228 = vpow2.f32 %v1179_v53  ;;  %v1159_v58 = vsub.f32 %v4763_v21, %v1136_v61  ;;  %v1158_v62 = vsub.f32 %v4767_v24, %v1134_v57  ;;  %v1472_v61 = vld [vmem:[%s5350_s5] sm:$0xff]  ;;  %v1473_v57 = vld [vmem:[%s5350_s5 + $0x8] sm:$0xff] }
 0x2ee   : > { %4230 = vpow2.f32 %v1177_v54 }
 0x2ef   : > { %v4839_v63 = vpop.eup %4220  ;;  %v1183_v3 = vmul.f32 1.442695, %v1159_v58  ;;  %v1181_v1 = vmul.f32 1.442695, %v1158_v62  ;;  %v4029_v58 = vpack.c.bf16 %v1473_v57, %v1472_v61 }
 0x2f0   : > { %v4841_v4 = vpop.eup %4222  ;;  %v1140_v2 = vpop.xlane.xlu1 %1139  ;;  %1201 = vadd.xlane.f32.xlu0 %v4839_v63 }
 0x2f1   : > { %v1138_v7 = vpop.xlane.xlu0 %1137  ;;  %4232 = vpow2.f32 %v1183_v3  ;;  %v1161_v10 = vsub.f32 %v4779_v39, %v1140_v2  ;;  %1203 = vadd.xlane.f32.xlu1 %v4841_v4  ;;  %4030 = vmatprep.subr.bf16.mxu1 %v4029_v58 }
 0x2f2   : > { %v1160_v21 = vsub.f32 %v4783_v40, %v1138_v7  ;;  %4234 = vpow2.f32 %v1181_v1 }
 0x2f3   : > { %v4847_v24 = vpop.eup %4224  ;;  %v1187_v11 = vmul.f32 1.442695, %v1161_v10 }
 0x2f4   : > { %v1185_v12 = vmul.f32 1.442695, %v1160_v21  ;;  %v4849_v13 = vpop.eup %4226  ;;  %v1144_v14 = vpop.xlane.xlu1 %1143 }
 0x2f5   : > { %v1142_v25 = vpop.xlane.xlu0 %1141  ;;  %4236 = vpow2.f32 %v1187_v11  ;;  %v1163_v26 = vsub.f32 %v4797_v59, %v1144_v14  ;;  %1207 = vadd.xlane.f32.xlu1 %v4847_v24  ;;  %1205 = vadd.xlane.f32.xlu0 %v4849_v13 }
 0x2f6   : > { %v1162_v39 = vsub.f32 %v4801_v60, %v1142_v25  ;;  %4238 = vpow2.f32 %v1185_v12 }
 0x2f7   : > { %v4855_v40 = vpop.eup %4228  ;;  %v1191_v27 = vmul.f32 1.442695, %v1163_v26 }
 0x2f8   : > { %v1189_v28 = vmul.f32 1.442695, %v1162_v39  ;;  %v4857_v34 = vpop.eup %4230  ;;  %v1148_v36 = vpop.xlane.xlu1 %1147 }
 0x2f9   : > { %v1146_v37 = vpop.xlane.xlu0 %1145  ;;  %4240 = vpow2.f32 %v1191_v27  ;;  %v1165_v38 = vsub.f32 %v4817_v9, %v1148_v36  ;;  %1211 = vadd.xlane.f32.xlu1 %v4855_v40  ;;  %1209 = vadd.xlane.f32.xlu0 %v4857_v34 }
 0x2fa   : > { %v1164_v59 = vsub.f32 %v4813_v8, %v1146_v37  ;;  %4242 = vpow2.f32 %v1189_v28 }
 0x2fb   : > { %v4863_v60 = vpop.eup %4232  ;;  %v1195_v47 = vmul.f32 1.442695, %v1165_v38 }
 0x2fc   : > { %v1193_v48 = vmul.f32 1.442695, %v1164_v59  ;;  %v4865_v49 = vpop.eup %4234 }
 0x2fd   : > { %v1150_v33 = vpop.xlane.xlu0 %1149  ;;  %4244 = vpow2.f32 %v1195_v47  ;;  %1215 = vadd.xlane.f32.xlu1 %v4863_v60  ;;  %1213 = vadd.xlane.f32.xlu0 %v4865_v49 }
 0x2fe   : > { %v1166_v9 = vsub.f32 %v4824_v17, %v1150_v33  ;;  %4246 = vpow2.f32 %v1193_v48  ;;  %v1474_v48 = vld [vmem:[%s5350_s5 + $0x10] sm:$0xff]  ;;  %v1475_v33 = vld [vmem:[%s5350_s5 + $0x18] sm:$0xff] }
 0x2ff   : > { %v4870_v50 = vpop.eup %4236 }
 0x300   : > { %v1197_v51 = vmul.f32 1.442695, %v1166_v9  ;;  %v4872_v8 = vpop.eup %4238 }
 0x301   : > { %1219 = vadd.xlane.f32.xlu1 %v4870_v50  ;;  %1217 = vadd.xlane.f32.xlu0 %v4872_v8 }
 0x302   : > { %4248 = vpow2.f32 %v1197_v51 }
 0x303   : > { %v4876_v52 = vpop.eup %4240 }
 0x304   : > { %v4878_v43 = vpop.eup %4242 }
 0x305   : > { %1223 = vadd.xlane.f32.xlu1 %v4876_v52  ;;  %1221 = vadd.xlane.f32.xlu0 %v4878_v43 }
 0x307   : > { %v4882_v17 = vpop.eup %4244 }
 0x308   : > { %v4884_v53 = vpop.eup %4246 }
 0x309   : > { %1227 = vadd.xlane.f32.xlu1 %v4882_v17  ;;  %1225 = vadd.xlane.f32.xlu0 %v4884_v53 }
 0x30c   : > { %v4888_v54 = vpop.eup %4248 }
 0x30d   : > { %1229 = vadd.xlane.f32.xlu0 %v4888_v54 }
 0x379   : > { %v1200_v62 = vpop.xlane.xlu1 %1199 }
 0x37a   : > { %4250 = vrcp.f32 %v1200_v62 }
 0x37d   : > { %v1202_v3 = vpop.xlane.xlu0 %1201 }
 0x37e   : > { %v1204_v1 = vpop.xlane.xlu1 %1203  ;;  %4252 = vrcp.f32 %v1202_v3 }
 0x37f   : > { %4254 = vrcp.f32 %v1204_v1 }
 0x382   : > { %v1208_v2 = vpop.xlane.xlu1 %1207  ;;  %v1206_v7 = vpop.xlane.xlu0 %1205 }
 0x383   : > { %4256 = vrcp.f32 %v1208_v2 }
 0x384   : > { %v4251_v10 = vpop.eup %4250  ;;  %4258 = vrcp.f32 %v1206_v7 }
 0x385   : > { %v1247_v21 = vmul.f32 %v4251_v10, %v1200_v62 }
 0x386   : > { %v1212_v11 = vpop.xlane.xlu1 %1211  ;;  %v1210_v12 = vpop.xlane.xlu0 %1209 }
 0x387   : > { %v1263_v14 = vsub.f32 2.0, %v1247_v21  ;;  %4260 = vrcp.f32 %v1212_v11  ;;  %v4033_v21 = vpack.c.bf16 %v1475_v33, %v1474_v48 }
 0x388   : > { %v4253_v25 = vpop.eup %4252  ;;  %4262 = vrcp.f32 %v1210_v12 }
 0x389   : > { %v4255_v26 = vpop.eup %4254  ;;  %v1279_v39 = vmul.f32 %v4251_v10, %v1263_v14  ;;  %v1248_v27 = vmul.f32 %v4253_v25, %v1202_v3 }
 0x38a   : > { %v1249_v28 = vmul.f32 %v4255_v26, %v1204_v1  ;;  %v1216_v36 = vpop.xlane.xlu1 %1215  ;;  %v1214_v37 = vpop.xlane.xlu0 %1213 }
 0x38b   : > { %v1264_v38 = vsub.f32 2.0, %v1248_v27  ;;  %4264 = vrcp.f32 %v1216_v36  ;;  %v1295_v59 = vmul.f32 %v4834_v44, %v1279_v39  ;;  %v1476_v27 = vld [vmem:[%s5350_s5 + $0x20] sm:$0xff] }
 0x38c   : > { %v1265_v47 = vsub.f32 2.0, %v1249_v28  ;;  %4266 = vrcp.f32 %v1214_v37 }
 0x38d   : > { %v4257_v9 = vpop.eup %4256  ;;  %v1280_v51 = vmul.f32 %v4253_v25, %v1264_v38  ;;  %3651 = vmatprep.mubr.f32.mxu1 %v1295_v59  ;;  %v1477_v25 = vld [vmem:[%s5350_s5 + $0x28] sm:$0xff] }
 0x38e   : > { %v4259_v61 = vpop.eup %4258  ;;  %v1281_v57 = vmul.f32 %v4255_v26, %v1265_v47  ;;  %v1251_v62 = vmul.f32 %v4257_v9, %v1208_v2  ;;  %v1220_v3 = vpop.xlane.xlu1 %1219  ;;  %v4037_v48 = vpack.c.bf16 %v1477_v25, %v1476_v27 }
 0x38f   : > { %v1218_v1 = vpop.xlane.xlu0 %1217  ;;  %v1296_v44 = vmul.f32 %v4839_v63, %v1280_v51  ;;  %v1250_v10 = vmul.f32 %v4259_v61, %v1206_v7  ;;  %4268 = vrcp.f32 %v1220_v3 }
 0x390   : > { %v1267_v14 = vsub.f32 2.0, %v1251_v62  ;;  %4270 = vrcp.f32 %v1218_v1  ;;  %v1297_v39 = vmul.f32 %v4841_v4, %v1281_v57  ;;  %v1478_v57 = vld [vmem:[%s5350_s5 + $0x30] sm:$0xff] }
 0x391   : > { %v4261_v2 = vpop.eup %4260  ;;  %v1266_v26 = vsub.f32 2.0, %v1250_v10  ;;  %3652 = vmatmul.mubr.f32.vlgmr.msra.gmra.mrb[16].mxu1 %v1296_v44 }
 0x392   : > { %v4263_v28 = vpop.eup %4262  ;;  %v1283_v63 = vmul.f32 %v4257_v9, %v1267_v14  ;;  %v1253_v7 = vmul.f32 %v4261_v2, %v1212_v11  ;;  %v1224_v38 = vpop.xlane.xlu1 %1223  ;;  %3654 = vmatprep.mubr.f32.mxu1 %v1297_v39  ;;  %4032 = vmatpush3.bf16.msra.mxu1 %v4029_v58  ;;  %v1479_v11 = vld [vmem:[%s5350_s5 + $0x38] sm:$0xff] }
 0x393   : > { %v1222_v59 = vpop.xlane.xlu0 %1221  ;;  %v1282_v47 = vmul.f32 %v4259_v61, %v1266_v26  ;;  %v1252_v4 = vmul.f32 %v4263_v28, %v1210_v12  ;;  %4272 = vrcp.f32 %v1224_v38  ;;  %4034 = vmatprep.subr.bf16.mxu1 %v4033_v21  ;;  %v4041_v27 = vpack.c.bf16 %v1479_v11, %v1478_v57 }
 0x394   : > { %v1269_v33 = vsub.f32 2.0, %v1253_v7  ;;  %4274 = vrcp.f32 %v1222_v59  ;;  %v1299_v51 = vmul.f32 %v4847_v24, %v1283_v63 }
 0x395   : > { %v4265_v9 = vpop.eup %4264  ;;  %v1268_v62 = vsub.f32 2.0, %v1252_v4  ;;  %v1298_v58 = vmul.f32 %v4849_v13, %v1282_v47 }
 0x396   : > { %v4267_v12 = vpop.eup %4266  ;;  %v1285_v61 = vmul.f32 %v4261_v2, %v1269_v33  ;;  %v1255_v44 = vmul.f32 %v4265_v9, %v1216_v36  ;;  %v1228_v10 = vpop.xlane.xlu1 %1227  ;;  %4036 = vmatpush3.bf16.msra.mxu1 %v4033_v21 }
 0x397   : > { %v1226_v14 = vpop.xlane.xlu0 %1225  ;;  %v1284_v39 = vmul.f32 %v4263_v28, %v1268_v62  ;;  %v1254_v24 = vmul.f32 %v4267_v12, %v1214_v37  ;;  %4276 = vrcp.f32 %v1228_v10  ;;  %3655 = vmatmul.mubr.f32.gmra.mrb[18].mxu1 %v1298_v58  ;;  %4038 = vmatprep.subr.bf16.mxu1 %v4037_v48 }
 0x398   : > { %v1271_v25 = vsub.f32 2.0, %v1255_v44  ;;  %4278 = vrcp.f32 %v1226_v14  ;;  %3657 = vmatprep.mubr.f32.mxu1 %v1299_v51  ;;  %v1301_v26 = vmul.f32 %v4855_v40, %v1285_v61 }
 0x399   : > { %v4269_v63 = vpop.eup %4268  ;;  %v1270_v7 = vsub.f32 2.0, %v1254_v24  ;;  %v1300_v13 = vmul.f32 %v4857_v34, %v1284_v39 }
 0x39a   : > { %v4271_v2 = vpop.eup %4270  ;;  %v1287_v36 = vmul.f32 %v4265_v9, %v1271_v25  ;;  %v1257_v47 = vmul.f32 %v4269_v63, %v1220_v3  ;;  %4040 = vmatpush3.bf16.msra.mxu1 %v4037_v48 }
 0x39b   : > { %v1230_v4 = vpop.xlane.xlu0 %1229  ;;  %v1286_v21 = vmul.f32 %v4267_v12, %v1270_v7  ;;  %v1256_v37 = vmul.f32 %v4271_v2, %v1218_v1  ;;  %3658 = vmatmul.mubr.f32.gmra.mrb[20].mxu1 %v1300_v13  ;;  %4042 = vmatprep.subr.bf16.mxu1 %v4041_v27 }
 0x39c   : > { %4280 = vrcp.f32 %v1230_v4  ;;  %v1273_v28 = vsub.f32 2.0, %v1257_v47  ;;  %3660 = vmatprep.mubr.f32.mxu1 %v1301_v26  ;;  %v1303_v33 = vmul.f32 %v4863_v60, %v1287_v36 }
 0x39d   : > { %v4273_v51 = vpop.eup %4272  ;;  %v1272_v40 = vsub.f32 2.0, %v1256_v37  ;;  %v1302_v57 = vmul.f32 %v4865_v49, %v1286_v21 }
 0x39e   : > { %v4275_v11 = vpop.eup %4274  ;;  %v1289_v34 = vmul.f32 %v4269_v63, %v1273_v28  ;;  %v1259_v62 = vmul.f32 %v4273_v51, %v1224_v38  ;;  %4044 = vmatpush3.bf16.msra.mxu1 %v4041_v27 }
 0x39f   : > { %v1288_v3 = vmul.f32 %v4271_v2, %v1272_v40  ;;  %v1258_v9 = vmul.f32 %v4275_v11, %v1222_v59  ;;  %3661 = vmatmul.mubr.f32.gmra.mrb[22].mxu1 %v1302_v57 }
 0x3a0   : > { %v1275_v48 = vsub.f32 2.0, %v1259_v62  ;;  %3663 = vmatprep.mubr.f32.mxu1 %v1303_v33  ;;  %v1305_v1 = vmul.f32 %v4870_v50, %v1289_v34 }
 0x3a1   : > { %v4277_v58 = vpop.eup %4276  ;;  %v1274_v12 = vsub.f32 2.0, %v1258_v9  ;;  %v1304_v61 = vmul.f32 %v4872_v8, %v1288_v3 }
 0x3a2   : > { %v4279_v60 = vpop.eup %4278  ;;  %v1291_v44 = vmul.f32 %v4273_v51, %v1275_v48  ;;  %v1261_v39 = vmul.f32 %v4277_v58, %v1228_v10 }
 0x3a3   : > { %v1290_v24 = vmul.f32 %v4275_v11, %v1274_v12  ;;  %v1260_v49 = vmul.f32 %v4279_v60, %v1226_v14  ;;  %3664 = vmatmul.mubr.f32.gmra.mrb[24].mxu1 %v1304_v61 }
 0x3a4   : > { %v1277_v25 = vsub.f32 2.0, %v1261_v39  ;;  %3666 = vmatprep.mubr.f32.mxu1 %v1305_v1  ;;  %v1307_v38 = vmul.f32 %v4876_v52, %v1291_v44  ;;  %v1673_v52 = vld [vmem:[%s5351_s6] sm:$0xff] }
 0x3a5   : > { %v1276_v27 = vsub.f32 2.0, %v1260_v49  ;;  %v1306_v26 = vmul.f32 %v4878_v43, %v1290_v24  ;;  %v1674_v43 = vld [vmem:[%s5351_s6 + $0x8] sm:$0xff] }
 0x3a6   : > { %v4281_v59 = vpop.eup %4280  ;;  %v1293_v63 = vmul.f32 %v4277_v58, %v1277_v25  ;;  %v4045_v36 = vpack.c.bf16 %v1674_v43, %v1673_v52 }
 0x3a7   : > { %v1262_v50 = vmul.f32 %v4281_v59, %v1230_v4  ;;  %v1292_v7 = vmul.f32 %v4279_v60, %v1276_v27  ;;  %3667 = vmatmul.mubr.f32.gmra.mrb[26].mxu1 %v1306_v26 }
 0x3a8   : > { %3669 = vmatprep.mubr.f32.mxu1 %v1307_v38  ;;  %v1309_v8 = vmul.f32 %v4882_v17, %v1293_v63  ;;  %v1675_v17 = vld [vmem:[%s5351_s6 + $0x10] sm:$0xff]  ;;  %4046 = vmatprep.subr.bf16.mxu0 %v4045_v36 }
 0x3a9   : > { %v1278_v13 = vsub.f32 2.0, %v1262_v50  ;;  %v1308_v10 = vmul.f32 %v4884_v53, %v1292_v7  ;;  %v1676_v53 = vld [vmem:[%s5351_s6 + $0x18] sm:$0xff]  ;;  %4048 = vmatpush3.bf16.msra.mxu0 %v4045_v36 }
 0x3aa   : > { %v4049_v47 = vpack.c.bf16 %v1676_v53, %v1675_v17 }
 0x3ab   : > { %v1294_v14 = vmul.f32 %v4281_v59, %v1278_v13  ;;  %3670 = vmatmul.mubr.f32.gmra.mrb[28].mxu1 %v1308_v10 }
 0x3ac   : > { %3672 = vmatprep.mubr.f32.mxu1 %v1309_v8  ;;  %4050 = vmatprep.subr.bf16.mxu0 %v4049_v47 }
 0x3ad   : > { %v1310_v2 = vmul.f32 %v4888_v54, %v1294_v14  ;;  %4052 = vmatpush3.bf16.msra.mxu0 %v4049_v47 }
 0x3ae   : > { %4053 = vmatprep.subr.bf16.mxu0 %v4410_v31 }
 0x3af   : > { %3673 = vmatmul.mubr.f32.gmra.mrb[30].mxu1 %v1310_v2 }
 0x464   : > { %v3653_v54 = vpop.f32.mrb[16].mxu1 }
 0x465   : > { %v1377_v4 = vpop.f32.mrb[17].mxu1  ;;  %v1457_v37 = vmax.f32 %v3653_v54, 0.0 }
 0x466   : > { %v1456_v21 = vmax.f32 %v1377_v4, 0.0 }
 0x468   : > { %3691 = vmatprep.mubr.msk.f32.mxu1 %vm5364_vm2, %v1456_v21 }
 0x469   : > { %3692 = vmatmul.mubr.msk.f32.vlgmr.msra.gmra.mrb[32].mxu1 %vm5364_vm2, %v1457_v37 }
 0x46a   : > { %v3656_v28 = vpop.f32.mrb[18].mxu1 }
 0x46b   : > { %v1387_v33 = vpop.f32.mrb[19].mxu1  ;;  %v1459_v40 = vmax.f32 %v3656_v28, 0.0 }
 0x46c   : > { %v1458_v51 = vmax.f32 %v1387_v33, 0.0 }
 0x46e   : > { %v3659_v57 = vpop.f32.mrb[20].mxu1  ;;  %3694 = vmatprep.mubr.msk.f32.mxu1 %vm5364_vm2, %v1458_v51 }
 0x46f   : > { %v1397_v11 = vpop.f32.mrb[21].mxu1  ;;  %3695 = vmatmul.mubr.msk.f32.gmra.mrb[34].mxu1 %vm5364_vm2, %v1459_v40  ;;  %v1461_v62 = vmax.f32 %v3659_v57, 0.0 }
 0x470   : > { %v1460_v34 = vmax.f32 %v1397_v11, 0.0 }
 0x472   : > { %v3662_v3 = vpop.f32.mrb[22].mxu1  ;;  %3697 = vmatprep.mubr.msk.f32.mxu1 %vm5364_vm2, %v1460_v34 }
 0x473   : > { %v1407_v9 = vpop.f32.mrb[23].mxu1  ;;  %3698 = vmatmul.mubr.msk.f32.gmra.mrb[36].mxu1 %vm5364_vm2, %v1461_v62  ;;  %v1463_v1 = vmax.f32 %v3662_v3, 0.0 }
 0x474   : > { %v1462_v48 = vmax.f32 %v1407_v9, 0.0 }
 0x476   : > { %v3665_v58 = vpop.f32.mrb[24].mxu1  ;;  %3700 = vmatprep.mubr.msk.f32.mxu1 %vm5364_vm2, %v1462_v48  ;;  %v1677_v48 = vld [vmem:[%s5352_s7] sm:$0x1] }
 0x477   : > { %v1417_v12 = vpop.f32.mrb[25].mxu1  ;;  %3701 = vmatmul.mubr.msk.f32.gmra.mrb[38].mxu1 %vm5364_vm2, %v1463_v1  ;;  %v1465_v60 = vmax.f32 %v3665_v58, 0.0 }
 0x478   : > { %v1464_v61 = vmax.f32 %v1417_v12, 0.0 }
 0x47a   : > { %v3668_v44 = vpop.f32.mrb[26].mxu1  ;;  %3703 = vmatprep.mubr.msk.f32.mxu1 %vm5364_vm2, %v1464_v61 }
 0x47b   : > { %v1427_v39 = vpop.f32.mrb[27].mxu1  ;;  %3704 = vmatmul.mubr.msk.f32.gmra.mrb[40].mxu1 %vm5364_vm2, %v1465_v60  ;;  %v1467_v49 = vmax.f32 %v3668_v44, 0.0 }
 0x47c   : > { %v1466_v24 = vmax.f32 %v1427_v39, 0.0 }
 0x47e   : > { %v3671_v25 = vpop.f32.mrb[28].mxu1  ;;  %3706 = vmatprep.mubr.msk.f32.mxu1 %vm5364_vm2, %v1466_v24 }
 0x47f   : > { %v1437_v38 = vpop.f32.mrb[29].mxu1  ;;  %3707 = vmatmul.mubr.msk.f32.gmra.mrb[42].mxu1 %vm5364_vm2, %v1467_v49  ;;  %v1469_v27 = vmax.f32 %v3671_v25, 0.0 }
 0x480   : > { %v1468_v59 = vmax.f32 %v1437_v38, 0.0 }
 0x482   : > { %v3674_v26 = vpop.f32.mrb[30].mxu1  ;;  %3709 = vmatprep.mubr.msk.f32.mxu1 %vm5364_vm2, %v1468_v59 }
 0x483   : > { %v1447_v63 = vpop.f32.mrb[31].mxu1  ;;  %3710 = vmatmul.mubr.msk.f32.gmra.mrb[44].mxu1 %vm5364_vm2, %v1469_v27  ;;  %v1471_v7 = vmax.f32 %v3674_v26, 0.0 }
 0x484   : > { %v1470_v50 = vmax.f32 %v1447_v63, 0.0 }
 0x486   : > { %3712 = vmatprep.mubr.msk.f32.mxu1 %vm5364_vm2, %v1470_v50 }
 0x487   : > { %3713 = vmatmul.mubr.msk.f32.gmra.mrb[46].mxu1 %vm5364_vm2, %v1471_v7 }
 0x53c   : > { %v3693_v13 = vpop.f32.mrb[32].mxu1 }
 0x53d   : > { %v1594_v8 = vpop.f32.mrb[33].mxu1 }
 0x53e   : > { %v4054_v14 = vpack.c.bf16 %v3693_v13, %v1594_v8  ;;  %3723 = vmatprep.mubr.msk.f32.mxu0 %vm1678_vm9, %v1594_v8 }
 0x53f   : > { %3724 = vmatmul.mubr.msk.f32.vlgmr.msra.gmra.mrb[18].mxu0 %vm1678_vm9, %v3693_v13 }
 0x540   : > { %4056 = vmatpush3.bf16.xpose.msk.msra.mxu0 %vm4962_vm12, %v4054_v14  ;;  %4086 = vmatprep.subr.bf16.mxu1 %v4054_v14 }
 0x541   : > { %4088 = vmatpush3.bf16.msra.mxu1 %v4054_v14  ;;  %4057 = vmatprep.subr.bf16.mxu0 %v4410_v31 }
 0x542   : > { %v3696_v2 = vpop.f32.mrb[34].mxu1 }
 0x543   : > { %v1604_v52 = vpop.f32.mrb[35].mxu1 }
 0x544   : > { %v4058_v43 = vpack.c.bf16 %v3696_v2, %v1604_v52  ;;  %3726 = vmatprep.mubr.msk.f32.mxu0 %vm1678_vm9, %v1604_v52 }
 0x545   : > { %3727 = vmatmul.mubr.msk.f32.gmra.mrb[20].mxu0 %vm1678_vm9, %v3696_v2 }
 0x546   : > { %v3699_v17 = vpop.f32.mrb[36].mxu1  ;;  %4090 = vmatprep.subr.bf16.mxu1 %v4058_v43 }
 0x547   : > { %v1614_v36 = vpop.f32.mrb[37].mxu1  ;;  %4092 = vmatpush3.bf16.msra.mxu1 %v4058_v43 }
 0x548   : > { %v4062_v53 = vpack.c.bf16 %v3699_v17, %v1614_v36  ;;  %3729 = vmatprep.mubr.msk.f32.mxu0 %vm1678_vm9, %v1614_v36  ;;  %4060 = vmatpush3.bf16.xpose.msk.msra.mxu0 %vm4962_vm12, %v4058_v43 }
 0x549   : > { %3730 = vmatmul.mubr.msk.f32.gmra.mrb[22].mxu0 %vm1678_vm9, %v3699_v17  ;;  %4061 = vmatprep.subr.bf16.mxu0 %v4410_v31 }
 0x54a   : > { %v3702_v47 = vpop.f32.mrb[38].mxu1  ;;  %4094 = vmatprep.subr.bf16.mxu1 %v4062_v53 }
 0x54b   : > { %v1624_v54 = vpop.f32.mrb[39].mxu1  ;;  %4096 = vmatpush3.bf16.msra.mxu1 %v4062_v53 }
 0x54c   : > { %v4066_v4 = vpack.c.bf16 %v3702_v47, %v1624_v54  ;;  %3732 = vmatprep.mubr.msk.f32.mxu0 %vm1678_vm9, %v1624_v54 }
 0x54d   : > { %3733 = vmatmul.mubr.msk.f32.gmra.mrb[24].mxu0 %vm1678_vm9, %v3702_v47 }
 0x54e   : > { %v3705_v21 = vpop.f32.mrb[40].mxu1  ;;  %4098 = vmatprep.subr.bf16.mxu1 %v4066_v4 }
 0x54f   : > { %v1634_v37 = vpop.f32.mrb[41].mxu1  ;;  %4100 = vmatpush3.bf16.msra.mxu1 %v4066_v4 }
 0x550   : > { %v4070_v28 = vpack.c.bf16 %v3705_v21, %v1634_v37  ;;  %3735 = vmatprep.mubr.msk.f32.mxu0 %vm1678_vm9, %v1634_v37  ;;  %4064 = vmatpush3.bf16.xpose.msk.msra.mxu0 %vm4962_vm12, %v4062_v53 }
 0x551   : > { %3736 = vmatmul.mubr.msk.f32.gmra.mrb[26].mxu0 %vm1678_vm9, %v3705_v21  ;;  %4065 = vmatprep.subr.bf16.mxu0 %v4410_v31 }
 0x552   : > { %v3708_v33 = vpop.f32.mrb[42].mxu1  ;;  %4102 = vmatprep.subr.bf16.mxu1 %v4070_v28 }
 0x553   : > { %v1644_v51 = vpop.f32.mrb[43].mxu1  ;;  %4104 = vmatpush3.bf16.msra.mxu1 %v4070_v28 }
 0x554   : > { %v4074_v40 = vpack.c.bf16 %v3708_v33, %v1644_v51  ;;  %3738 = vmatprep.mubr.msk.f32.mxu0 %vm1678_vm9, %v1644_v51 }
 0x555   : > { %3739 = vmatmul.mubr.msk.f32.gmra.mrb[28].mxu0 %vm1678_vm9, %v3708_v33 }
 0x556   : > { %v3711_v57 = vpop.f32.mrb[44].mxu1  ;;  %4106 = vmatprep.subr.bf16.mxu1 %v4074_v40 }
 0x557   : > { %v1654_v11 = vpop.f32.mrb[45].mxu1  ;;  %4108 = vmatpush3.bf16.msra.mxu1 %v4074_v40 }
 0x558   : > { %v4078_v34 = vpack.c.bf16 %v3711_v57, %v1654_v11  ;;  %3741 = vmatprep.mubr.msk.f32.mxu0 %vm1678_vm9, %v1654_v11  ;;  %4068 = vmatpush3.bf16.xpose.msk.msra.mxu0 %vm4962_vm12, %v4066_v4 }
 0x559   : > { %3742 = vmatmul.mubr.msk.f32.gmra.mrb[30].mxu0 %vm1678_vm9, %v3711_v57  ;;  %4069 = vmatprep.subr.bf16.mxu0 %v4410_v31 }
 0x55a   : > { %v3714_v62 = vpop.f32.mrb[46].mxu1  ;;  %4110 = vmatprep.subr.bf16.mxu1 %v4078_v34 }
 0x55b   : > { %v1664_v3 = vpop.f32.mrb[47].mxu1  ;;  %4112 = vmatpush3.bf16.msra.mxu1 %v4078_v34 }
 0x55c   : > { %v4082_v9 = vpack.c.bf16 %v3714_v62, %v1664_v3  ;;  %3744 = vmatprep.mubr.msk.f32.mxu0 %vm1678_vm9, %v1664_v3 }
 0x55d   : > { %3745 = vmatmul.mubr.msk.f32.gmra.mrb[32].mxu0 %vm1678_vm9, %v3714_v62 }
 0x55e   : > { %4114 = vmatprep.subr.bf16.mxu1 %v4082_v9  ;;  %3779 = vmatprep.mubr.msk.f32.mxu0 %vm4411_vm1, %v4412_v32 }
 0x55f   : > { %4116 = vmatpush3.bf16.msra.mxu1 %v4082_v9 }
 0x560   : > { %4072 = vmatpush3.bf16.xpose.msk.msra.mxu0 %vm4962_vm12, %v4070_v28 }
 0x561   : > { %4073 = vmatprep.subr.bf16.mxu0 %v4410_v31 }
 0x568   : > { %4076 = vmatpush3.bf16.xpose.msk.msra.mxu0 %vm4962_vm12, %v4074_v40 }
 0x569   : > { %4077 = vmatprep.subr.bf16.mxu0 %v4410_v31 }
 0x570   : > { %4080 = vmatpush3.bf16.xpose.msk.msra.mxu0 %vm4962_vm12, %v4078_v34 }
 0x571   : > { %4081 = vmatprep.subr.bf16.mxu0 %v4410_v31 }
 0x578   : > { %4084 = vmatpush3.bf16.xpose.msk.msra.mxu0 %vm4962_vm12, %v4082_v9 }
 0x57f   : > { %3780 = vmatmul.mubr.msk.f32.vlgmr.msra.gmra.mrb[34].mxu0 %vm1678_vm9, %v1677_v48 }
 0x612   : > { %v3725_v1 = vpop.f32.mrb[18].mxu0 }
 0x613   : > { %1952 = vperm.xlu0 %4216, %v3725_v1   ;;  %v1793_v58 = vpop.f32.mrb[19].mxu0 }
 0x614   : > { %1947 = vperm.xlu1 %4217, %v1793_v58  }
 0x618   : > { %v3728_v12 = vpop.f32.mrb[20].mxu0 }
 0x619   : > { %v1803_v61 = vpop.f32.mrb[21].mxu0 }
 0x61a   : > { %1957 = vperm.xlu1 %4217, %v1803_v61  }
 0x61c   : > { %v3731_v60 = vpop.f32.mrb[22].mxu0 }
 0x61d   : > { %v1813_v44 = vpop.f32.mrb[23].mxu0 }
 0x61e   : > { %1962 = vperm.xlu1 %4217, %v3728_v12   ;;  %1967 = vperm.xlu0 %4216, %v1813_v44  }
 0x620   : > { %v3734_v39 = vpop.f32.mrb[24].mxu0 }
 0x621   : > { %v1823_v24 = vpop.f32.mrb[25].mxu0 }
 0x622   : > { %1972 = vperm.xlu1 %4217, %v3731_v60   ;;  %1977 = vperm.xlu0 %4216, %v1823_v24  }
 0x624   : > { %v3737_v49 = vpop.f32.mrb[26].mxu0 }
 0x625   : > { %v1833_v25 = vpop.f32.mrb[27].mxu0 }
 0x626   : > { %1982 = vperm.xlu1 %4217, %v3734_v39   ;;  %1987 = vperm.xlu0 %4216, %v1833_v25  }
 0x628   : > { %v3740_v38 = vpop.f32.mrb[28].mxu0 }
 0x629   : > { %v1843_v59 = vpop.f32.mrb[29].mxu0 }
 0x62a   : > { %1992 = vperm.xlu1 %4217, %v3737_v49   ;;  %1997 = vperm.xlu0 %4216, %v1843_v59  }
 0x62c   : > { %v3743_v27 = vpop.f32.mrb[30].mxu0 }
 0x62d   : > { %v1853_v26 = vpop.f32.mrb[31].mxu0 }
 0x62e   : > { %2002 = vperm.xlu1 %4217, %v3740_v38   ;;  %2007 = vperm.xlu0 %4216, %v1853_v26  }
 0x630   : > { %v3746_v63 = vpop.f32.mrb[32].mxu0 }
 0x631   : > { %v1863_v50 = vpop.f32.mrb[33].mxu0 }
 0x632   : > { %2012 = vperm.xlu1 %4217, %v3743_v27   ;;  %2017 = vperm.xlu0 %4216, %v1863_v50  }
 0x636   : > { %2022 = vperm.xlu1 %4217, %v3746_v63  }
 0x652   : > { %v1941_v7 = vpop.f32.mrb[34].mxu0 }
 0x653   : > { %v3781_v13 = vpop.f32.mrb[35].mxu0  ;;  %v5013_v8 = vrot.slane %v1941_v7, %v1021_v16 }
 0x692   : > { %v1953_v10 = vpop.permute.xlu0 %1952 }
 0x693   : > { %v2030_v14 = vadd.f32 %v5013_v8, %v1953_v10  ;;  %v1948_v2 = vpop.permute.xlu1 %1947 }
 0x694   : > { %v2029_v52 = vadd.f32 %v5013_v8, %v1948_v2 }
 0x695   : > { %v2062_v43 = vmul.f32 0.2, %v2030_v14  ;;  %vm2046_vm13 = vcmp.gt.f32.partialorder %v2030_v14, 0.0 }
 0x696   : > { %v2061_v17 = vmul.f32 0.2, %v2029_v52  ;;  %vm2045_vm12 = vcmp.gt.f32.partialorder %v2029_v52, 0.0 }
 0x697   : > { %v2078_v36 = vsel %vm2046_vm13, %v2030_v14, %v2062_v43 }
 0x698   : > { %v5019_v53 = vsel %vm1088_vm6, %v2078_v36, -9e+15  ;;  %v2077_v47 = vsel %vm2045_vm12, %v2029_v52, %v2061_v17 }
 0x699   : > { %v1958_v54 = vpop.permute.xlu1 %1957  ;;  %2111 = vmax.xlane.f32.xlu1 %v5019_v53  ;;  %v5024_v15 = vsel %vm1087_vm5, %v2077_v47, -9e+15 }
 0x69a   : > { %v2031_v16 = vadd.f32 %v5013_v8, %v1958_v54  ;;  %2109 = vmax.xlane.f32.xlu0 %v5024_v15 }
 0x69c   : > { %v2063_v4 = vmul.f32 0.2, %v2031_v16  ;;  %vm2047_vm2 = vcmp.gt.f32.partialorder %v2031_v16, 0.0 }
 0x69d   : > { %v1963_v21 = vpop.permute.xlu1 %1962  ;;  %v1968_v37 = vpop.permute.xlu0 %1967 }
 0x69e   : > { %v2032_v22 = vadd.f32 %v5013_v8, %v1963_v21  ;;  %v2033_v28 = vadd.f32 %v5013_v8, %v1968_v37  ;;  %v2079_v33 = vsel %vm2047_vm2, %v2031_v16, %v2063_v4 }
 0x69f   : > { %v5032_v51 = vsel %vm1089_vm7, %v2079_v33, -9e+15 }
 0x6a0   : > { %v2064_v19 = vmul.f32 0.2, %v2032_v22  ;;  %v2065_v40 = vmul.f32 0.2, %v2033_v28  ;;  %2113 = vmax.xlane.f32.xlu0 %v5032_v51  ;;  %vm2049_vm5 = vcmp.gt.f32.partialorder %v2033_v28, 0.0  ;;  %vm2048_vm6 = vcmp.gt.f32.partialorder %v2032_v22, 0.0 }
 0x6a1   : > { %v1973_v57 = vpop.permute.xlu1 %1972  ;;  %v1978_v11 = vpop.permute.xlu0 %1977 }
 0x6a2   : > { %v2034_v34 = vadd.f32 %v5013_v8, %v1973_v57  ;;  %v2035_v62 = vadd.f32 %v5013_v8, %v1978_v11  ;;  %v2081_v3 = vsel %vm2049_vm5, %v2033_v28, %v2065_v40  ;;  %v2080_v9 = vsel %vm2048_vm6, %v2032_v22, %v2064_v19 }
 0x6a3   : > { %v5039_v48 = vsel %vm1091_vm10, %v2081_v3, -9e+15  ;;  %v5043_v23 = vsel %vm1090_vm11, %v2080_v9, -9e+15  ;;  %vm5377_vm5 = vcmp.gt.f32.partialorder %v4746_v5, 0.0  ;;  %vm5378_vm6 = vcmp.gt.f32.partialorder %v4749_v6, 0.0 }
 0x6a4   : > { %v2066_v1 = vmul.f32 0.2, %v2034_v34  ;;  %v2067_v58 = vmul.f32 0.2, %v2035_v62  ;;  %2117 = vmax.xlane.f32.xlu1 %v5039_v48  ;;  %2115 = vmax.xlane.f32.xlu0 %v5043_v23  ;;  %vm2051_vm2 = vcmp.gt.f32.partialorder %v2035_v62, 0.0  ;;  %vm2050_vm7 = vcmp.gt.f32.partialorder %v2034_v34, 0.0 }
 0x6a5   : > { %v1983_v12 = vpop.permute.xlu1 %1982  ;;  %v1988_v61 = vpop.permute.xlu0 %1987 }
 0x6a6   : > { %v2036_v60 = vadd.f32 %v5013_v8, %v1983_v12  ;;  %v2037_v29 = vadd.f32 %v5013_v8, %v1988_v61  ;;  %v2083_v44 = vsel %vm2051_vm2, %v2035_v62, %v2067_v58  ;;  %v2082_v39 = vsel %vm2050_vm7, %v2034_v34, %v2066_v1 }
 0x6a7   : > { %v5051_v30 = vsel %vm1093_vm14, %v2083_v44, -9e+15  ;;  %v5055_v24 = vsel %vm1092_vm15, %v2082_v39, -9e+15  ;;  %vm5375_vm14 = vcmp.gt.f32.partialorder %v4716_v55, 0.0  ;;  %vm5376_vm15 = vcmp.gt.f32.partialorder %v4719_v56, 0.0 }
 0x6a8   : > { %v2068_v49 = vmul.f32 0.2, %v2036_v60  ;;  %v2069_v25 = vmul.f32 0.2, %v2037_v29  ;;  %2121 = vmax.xlane.f32.xlu1 %v5051_v30  ;;  %2119 = vmax.xlane.f32.xlu0 %v5055_v24  ;;  %vm2053_vm10 = vcmp.gt.f32.partialorder %v2037_v29, 0.0  ;;  %vm2052_vm11 = vcmp.gt.f32.partialorder %v2036_v60, 0.0 }
 0x6a9   : > { %v1993_v38 = vpop.permute.xlu1 %1992  ;;  %v1998_v59 = vpop.permute.xlu0 %1997 }
 0x6aa   : > { %v2038_v27 = vadd.f32 %v5013_v8, %v1993_v38  ;;  %v2039_v45 = vadd.f32 %v5013_v8, %v1998_v59  ;;  %v2085_v26 = vsel %vm2053_vm10, %v2037_v29, %v2069_v25  ;;  %v2084_v63 = vsel %vm2052_vm11, %v2036_v60, %v2068_v49 }
 0x6ab   : > { %v5063_v46 = vsel %vm5375_vm14, %v2085_v26, -9e+15  ;;  %v5067_v50 = vsel %vm5376_vm15, %v2084_v63, -9e+15  ;;  %vm5379_vm10 = vcmp.gt.f32.partialorder %v4756_v18, 0.0  ;;  %vm5380_vm11 = vcmp.gt.f32.partialorder %v4759_v20, 0.0 }
 0x6ac   : > { %v2070_v7 = vmul.f32 0.2, %v2038_v27  ;;  %v2071_v13 = vmul.f32 0.2, %v2039_v45  ;;  %2125 = vmax.xlane.f32.xlu1 %v5063_v46  ;;  %2123 = vmax.xlane.f32.xlu0 %v5067_v50  ;;  %vm2055_vm13 = vcmp.gt.f32.partialorder %v2039_v45, 0.0  ;;  %vm2054_vm12 = vcmp.gt.f32.partialorder %v2038_v27, 0.0 }
 0x6ad   : > { %v2003_v10 = vpop.permute.xlu1 %2002  ;;  %v2008_v14 = vpop.permute.xlu0 %2007 }
 0x6ae   : > { %v2040_v2 = vadd.f32 %v5013_v8, %v2003_v10  ;;  %v2041_v55 = vadd.f32 %v5013_v8, %v2008_v14  ;;  %v2087_v52 = vsel %vm2055_vm13, %v2039_v45, %v2071_v13  ;;  %v2086_v43 = vsel %vm2054_vm12, %v2038_v27, %v2070_v7 }
 0x6af   : > { %v5075_v56 = vsel %vm5377_vm5, %v2087_v52, -9e+15  ;;  %v5079_v17 = vsel %vm5378_vm6, %v2086_v43, -9e+15 }
 0x6b0   : > { %v2072_v36 = vmul.f32 0.2, %v2040_v2  ;;  %v2073_v47 = vmul.f32 0.2, %v2041_v55  ;;  %2129 = vmax.xlane.f32.xlu1 %v5075_v56  ;;  %2127 = vmax.xlane.f32.xlu0 %v5079_v17  ;;  %vm2057_vm2 = vcmp.gt.f32.partialorder %v2041_v55, 0.0  ;;  %vm2056_vm7 = vcmp.gt.f32.partialorder %v2040_v2, 0.0 }
 0x6b1   : > { %v2013_v54 = vpop.permute.xlu1 %2012  ;;  %v2018_v16 = vpop.permute.xlu0 %2017 }
 0x6b2   : > { %v2042_v4 = vadd.f32 %v5013_v8, %v2013_v54  ;;  %v2043_v5 = vadd.f32 %v5013_v8, %v2018_v16  ;;  %v2089_v21 = vsel %vm2057_vm2, %v2041_v55, %v2073_v47  ;;  %v2088_v37 = vsel %vm2056_vm7, %v2040_v2, %v2072_v36 }
 0x6b3   : > { %v5087_v6 = vsel %vm5379_vm10, %v2089_v21, -9e+15  ;;  %v5091_v22 = vsel %vm5380_vm11, %v2088_v37, -9e+15 }
 0x6b4   : > { %v2074_v28 = vmul.f32 0.2, %v2042_v4  ;;  %v2075_v33 = vmul.f32 0.2, %v2043_v5  ;;  %2133 = vmax.xlane.f32.xlu1 %v5087_v6  ;;  %2131 = vmax.xlane.f32.xlu0 %v5091_v22  ;;  %vm2059_vm14 = vcmp.gt.f32.partialorder %v2043_v5, 0.0  ;;  %vm2058_vm15 = vcmp.gt.f32.partialorder %v2042_v4, 0.0 }
 0x6b5   : > { %v2023_v19 = vpop.permute.xlu1 %2022 }
 0x6b6   : > { %v2044_v40 = vadd.f32 %v5013_v8, %v2023_v19  ;;  %v2091_v57 = vsel %vm2059_vm14, %v2043_v5, %v2075_v33  ;;  %v2090_v11 = vsel %vm2058_vm15, %v2042_v4, %v2074_v28 }
 0x6b7   : > { %v5098_v18 = vsel %vm1101_vm0, %v2091_v57, -9e+15  ;;  %v5102_v20 = vsel %vm1100_vm4, %v2090_v11, -9e+15 }
 0x6b8   : > { %v2076_v34 = vmul.f32 0.2, %v2044_v40  ;;  %2137 = vmax.xlane.f32.xlu1 %v5098_v18  ;;  %2135 = vmax.xlane.f32.xlu0 %v5102_v20  ;;  %vm2060_vm13 = vcmp.gt.f32.partialorder %v2044_v40, 0.0 }
 0x6ba   : > { %v2092_v62 = vsel %vm2060_vm13, %v2044_v40, %v2076_v34 }
 0x6bb   : > { %v5108_v8 = vsel %vm1102_vm8, %v2092_v62, -9e+15 }
 0x6bc   : > { %2139 = vmax.xlane.f32.xlu0 %v5108_v8 }
 0x726   : > { %v2112_v42 = vpop.xlane.xlu1 %2111 }
 0x727   : > { %v2142_v3 = vsub.f32 %v5019_v53, %v2112_v42  ;;  %v2110_v9 = vpop.xlane.xlu0 %2109 }
 0x728   : > { %v2141_v41 = vsub.f32 %v5024_v15, %v2110_v9 }
 0x729   : > { %v2159_v1 = vmul.f32 1.442695, %v2142_v3 }
 0x72a   : > { %v2157_v58 = vmul.f32 1.442695, %v2141_v41  ;;  %v2903_v41 = vld [vmem:[%s5356_s11 + $0x2] sm:$0x1] }
 0x72b   : > { %4282 = vpow2.f32 %v2159_v1  ;;  %v2462_v1 = vld [vmem:[%s5353_s8] sm:$0xff] }
 0x72c   : > { %4284 = vpow2.f32 %v2157_v58  ;;  %v2463_v58 = vld [vmem:[%s5353_s8 + $0x8] sm:$0xff] }
 0x72d   : > { %v2114_v12 = vpop.xlane.xlu0 %2113 }
 0x72e   : > { %v2143_v61 = vsub.f32 %v5032_v51, %v2114_v12  ;;  %v4117_v12 = vpack.c.bf16 %v2463_v58, %v2462_v1 }
 0x730   : > { %v2161_v60 = vmul.f32 1.442695, %v2143_v61  ;;  %4118 = vmatprep.subr.bf16.mxu1 %v4117_v12 }
 0x731   : > { %v2118_v29 = vpop.xlane.xlu1 %2117  ;;  %v2116_v0 = vpop.xlane.xlu0 %2115 }
 0x732   : > { %4286 = vpow2.f32 %v2161_v60  ;;  %v2145_v44 = vsub.f32 %v5039_v48, %v2118_v29  ;;  %v2144_v39 = vsub.f32 %v5043_v23, %v2116_v0 }
 0x734   : > { %v2165_v49 = vmul.f32 1.442695, %v2145_v44  ;;  %v2163_v53 = vmul.f32 1.442695, %v2144_v39 }
 0x735   : > { %v5116_v25 = vpop.eup %4282  ;;  %v2122_v15 = vpop.xlane.xlu1 %2121 }
 0x736   : > { %v2120_v38 = vpop.xlane.xlu0 %2119  ;;  %v5118_v59 = vpop.eup %4284  ;;  %4288 = vpow2.f32 %v2165_v49  ;;  %v2147_v27 = vsub.f32 %v5051_v30, %v2122_v15  ;;  %2191 = vadd.xlane.f32.xlu0 %v5116_v25 }
 0x737   : > { %v2146_v51 = vsub.f32 %v5055_v24, %v2120_v38  ;;  %4290 = vpow2.f32 %v2163_v53  ;;  %2189 = vadd.xlane.f32.xlu1 %v5118_v59 }
 0x738   : > { %v2169_v48 = vmul.f32 1.442695, %v2147_v27 }
 0x739   : > { %v2167_v23 = vmul.f32 1.442695, %v2146_v51  ;;  %v2126_v45 = vpop.xlane.xlu1 %2125 }
 0x73a   : > { %v2124_v26 = vpop.xlane.xlu0 %2123  ;;  %4292 = vpow2.f32 %v2169_v48  ;;  %v2149_v63 = vsub.f32 %v5063_v46, %v2126_v45 }
 0x73b   : > { %v2148_v7 = vsub.f32 %v5067_v50, %v2124_v26  ;;  %4294 = vpow2.f32 %v2167_v23  ;;  %v2464_v26 = vld [vmem:[%s5353_s8 + $0x10] sm:$0xff] }
 0x73c   : > { %v5126_v13 = vpop.eup %4286  ;;  %v2173_v30 = vmul.f32 1.442695, %v2149_v63  ;;  %v2465_v63 = vld [vmem:[%s5353_s8 + $0x18] sm:$0xff] }
 0x73d   : > { %v2171_v10 = vmul.f32 1.442695, %v2148_v7  ;;  %v2130_v24 = vpop.xlane.xlu1 %2129  ;;  %2193 = vadd.xlane.f32.xlu1 %v5126_v13 }
 0x73e   : > { %v2128_v14 = vpop.xlane.xlu0 %2127  ;;  %4296 = vpow2.f32 %v2173_v30  ;;  %v2151_v2 = vsub.f32 %v5075_v56, %v2130_v24 }
 0x73f   : > { %v2150_v55 = vsub.f32 %v5079_v17, %v2128_v14  ;;  %4298 = vpow2.f32 %v2171_v10 }
 0x740   : > { %v5131_v52 = vpop.eup %4288  ;;  %v2177_v46 = vmul.f32 1.442695, %v2151_v2 }
 0x741   : > { %v2175_v43 = vmul.f32 1.442695, %v2150_v55  ;;  %v5133_v50 = vpop.eup %4290  ;;  %v2134_v36 = vpop.xlane.xlu1 %2133  ;;  %2197 = vadd.xlane.f32.xlu1 %v5131_v52  ;;  %v4121_v55 = vpack.c.bf16 %v2465_v63, %v2464_v26 }
 0x742   : > { %v2132_v47 = vpop.xlane.xlu0 %2131  ;;  %4300 = vpow2.f32 %v2177_v46  ;;  %v2153_v54 = vsub.f32 %v5087_v6, %v2134_v36  ;;  %2195 = vadd.xlane.f32.xlu0 %v5133_v50 }
 0x743   : > { %v2152_v56 = vsub.f32 %v5091_v22, %v2132_v47  ;;  %4302 = vpow2.f32 %v2175_v43 }
 0x744   : > { %v5139_v17 = vpop.eup %4292  ;;  %v2181_v16 = vmul.f32 1.442695, %v2153_v54 }
 0x745   : > { %v2179_v4 = vmul.f32 1.442695, %v2152_v56  ;;  %v5141_v5 = vpop.eup %4294  ;;  %v2138_v21 = vpop.xlane.xlu1 %2137  ;;  %2201 = vadd.xlane.f32.xlu1 %v5139_v17 }
 0x746   : > { %v2136_v37 = vpop.xlane.xlu0 %2135  ;;  %4304 = vpow2.f32 %v2181_v16  ;;  %v2155_v28 = vsub.f32 %v5098_v18, %v2138_v21  ;;  %2199 = vadd.xlane.f32.xlu0 %v5141_v5 }
 0x747   : > { %v2154_v6 = vsub.f32 %v5102_v20, %v2136_v37  ;;  %4306 = vpow2.f32 %v2179_v4 }
 0x748   : > { %v5147_v22 = vpop.eup %4296  ;;  %v2185_v33 = vmul.f32 1.442695, %v2155_v28 }
 0x749   : > { %v2183_v19 = vmul.f32 1.442695, %v2154_v6  ;;  %v5149_v40 = vpop.eup %4298  ;;  %2205 = vadd.xlane.f32.xlu1 %v5147_v22 }
 0x74a   : > { %v2140_v57 = vpop.xlane.xlu0 %2139  ;;  %4308 = vpow2.f32 %v2185_v33  ;;  %2203 = vadd.xlane.f32.xlu0 %v5149_v40 }
 0x74b   : > { %v2156_v11 = vsub.f32 %v5108_v8, %v2140_v57  ;;  %4310 = vpow2.f32 %v2183_v19 }
 0x74c   : > { %v5154_v18 = vpop.eup %4300 }
 0x74d   : > { %v2187_v34 = vmul.f32 1.442695, %v2156_v11  ;;  %v5156_v20 = vpop.eup %4302  ;;  %2209 = vadd.xlane.f32.xlu1 %v5154_v18 }
 0x74e   : > { %2207 = vadd.xlane.f32.xlu0 %v5156_v20 }
 0x74f   : > { %4312 = vpow2.f32 %v2187_v34 }
 0x750   : > { %v5160_v62 = vpop.eup %4304 }
 0x751   : > { %v5162_v42 = vpop.eup %4306  ;;  %2213 = vadd.xlane.f32.xlu1 %v5160_v62 }
 0x752   : > { %2211 = vadd.xlane.f32.xlu0 %v5162_v42 }
 0x754   : > { %v5166_v8 = vpop.eup %4308 }
 0x755   : > { %v5168_v3 = vpop.eup %4310  ;;  %2217 = vadd.xlane.f32.xlu1 %v5166_v8 }
 0x756   : > { %2215 = vadd.xlane.f32.xlu0 %v5168_v3 }
 0x759   : > { %v5172_v9 = vpop.eup %4312 }
 0x75a   : > { %2219 = vadd.xlane.f32.xlu0 %v5172_v9 }
 0x766   : > { %2906 = vperm.xlu1 %4217, %v2903_v41  }
 0x7c3   : > { %v2192_v61 = vpop.xlane.xlu0 %2191 }
 0x7c4   : > { %4314 = vrcp.f32 %v2192_v61  ;;  %v2190_v60 = vpop.xlane.xlu1 %2189 }
 0x7c5   : > { %4316 = vrcp.f32 %v2190_v60 }
 0x7ca   : > { %v2194_v29 = vpop.xlane.xlu1 %2193 }
 0x7cb   : > { %4318 = vrcp.f32 %v2194_v29 }
 0x7ce   : > { %v4315_v0 = vpop.eup %4314  ;;  %v2198_v44 = vpop.xlane.xlu1 %2197 }
 0x7cf   : > { %v4317_v39 = vpop.eup %4316  ;;  %v2238_v49 = vmul.f32 %v4315_v0, %v2192_v61  ;;  %4320 = vrcp.f32 %v2198_v44  ;;  %v2196_v53 = vpop.xlane.xlu0 %2195 }
 0x7d0   : > { %v2237_v15 = vmul.f32 %v4317_v39, %v2190_v60  ;;  %4322 = vrcp.f32 %v2196_v53 }
 0x7d1   : > { %v2254_v38 = vsub.f32 2.0, %v2238_v49 }
 0x7d2   : > { %v2253_v27 = vsub.f32 2.0, %v2237_v15  ;;  %v2202_v51 = vpop.xlane.xlu1 %2201 }
 0x7d3   : > { %v2270_v48 = vmul.f32 %v4315_v0, %v2254_v38  ;;  %4324 = vrcp.f32 %v2202_v51  ;;  %v2200_v23 = vpop.xlane.xlu0 %2199 }
 0x7d4   : > { %v2269_v45 = vmul.f32 %v4317_v39, %v2253_v27  ;;  %4326 = vrcp.f32 %v2200_v23 }
 0x7d5   : > { %v4319_v7 = vpop.eup %4318  ;;  %v2286_v14 = vmul.f32 %v5116_v25, %v2270_v48 }
 0x7d6   : > { %v2239_v30 = vmul.f32 %v4319_v7, %v2194_v29  ;;  %v2206_v10 = vpop.xlane.xlu1 %2205  ;;  %v2285_v24 = vmul.f32 %v5118_v59, %v2269_v45 }
 0x7d7   : > { %4328 = vrcp.f32 %v2206_v10  ;;  %v2204_v2 = vpop.xlane.xlu0 %2203 }
 0x7d8   : > { %v2255_v46 = vsub.f32 2.0, %v2239_v30  ;;  %4330 = vrcp.f32 %v2204_v2  ;;  %3814 = vmatprep.mubr.f32.mxu1 %v2285_v24 }
 0x7d9   : > { %v4321_v43 = vpop.eup %4320  ;;  %3815 = vmatmul.mubr.f32.vlgmr.msra.gmra.mrb[48].mxu1 %v2286_v14 }
 0x7da   : > { %v4323_v36 = vpop.eup %4322  ;;  %v2271_v47 = vmul.f32 %v4319_v7, %v2255_v46  ;;  %v2241_v54 = vmul.f32 %v4321_v43, %v2198_v44  ;;  %v2210_v56 = vpop.xlane.xlu1 %2209  ;;  %4120 = vmatpush3.bf16.msra.mxu1 %v4117_v12 }
 0x7db   : > { %v2240_v16 = vmul.f32 %v4323_v36, %v2196_v53  ;;  %4332 = vrcp.f32 %v2210_v56  ;;  %v2208_v4 = vpop.xlane.xlu0 %2207  ;;  %4122 = vmatprep.subr.bf16.mxu1 %v4121_v55 }
 0x7dc   : > { %v2257_v59 = vsub.f32 2.0, %v2241_v54  ;;  %4334 = vrcp.f32 %v2208_v4  ;;  %v2287_v25 = vmul.f32 %v5126_v13, %v2271_v47 }
 0x7dd   : > { %v4325_v21 = vpop.eup %4324  ;;  %v2256_v37 = vsub.f32 2.0, %v2240_v16 }
 0x7de   : > { %v4327_v28 = vpop.eup %4326  ;;  %v2273_v6 = vmul.f32 %v4321_v43, %v2257_v59  ;;  %v2243_v33 = vmul.f32 %v4325_v21, %v2202_v51  ;;  %v2214_v19 = vpop.xlane.xlu1 %2213  ;;  %3817 = vmatprep.mubr.f32.mxu1 %v2287_v25  ;;  %4124 = vmatpush3.bf16.msra.mxu1 %v4121_v55 }
 0x7df   : > { %v2272_v57 = vmul.f32 %v4323_v36, %v2256_v37  ;;  %v2242_v11 = vmul.f32 %v4327_v28, %v2200_v23  ;;  %4336 = vrcp.f32 %v2214_v19  ;;  %v2212_v34 = vpop.xlane.xlu0 %2211  ;;  %4141 = vmatprep.subr.bf16.mxu1 %v4410_v31 }
 0x7e0   : > { %v2259_v41 = vsub.f32 2.0, %v2243_v33  ;;  %4338 = vrcp.f32 %v2212_v34  ;;  %v2289_v1 = vmul.f32 %v5131_v52, %v2273_v6 }
 0x7e1   : > { %v4329_v58 = vpop.eup %4328  ;;  %v2258_v13 = vsub.f32 2.0, %v2242_v11  ;;  %v2288_v12 = vmul.f32 %v5133_v50, %v2272_v57 }
 0x7e2   : > { %v4331_v61 = vpop.eup %4330  ;;  %v2275_v60 = vmul.f32 %v4325_v21, %v2259_v41  ;;  %v2245_v29 = vmul.f32 %v4329_v58, %v2206_v10  ;;  %v2218_v0 = vpop.xlane.xlu1 %2217 }
 0x7e3   : > { %v2274_v44 = vmul.f32 %v4327_v28, %v2258_v13  ;;  %v2244_v39 = vmul.f32 %v4331_v61, %v2204_v2  ;;  %4340 = vrcp.f32 %v2218_v0  ;;  %3818 = vmatmul.mubr.f32.gmra.mrb[50].mxu1 %v2288_v12  ;;  %v2216_v49 = vpop.xlane.xlu0 %2215 }
 0x7e4   : > { %v2261_v53 = vsub.f32 2.0, %v2245_v29  ;;  %4342 = vrcp.f32 %v2216_v49  ;;  %3820 = vmatprep.mubr.f32.mxu1 %v2289_v1  ;;  %v2291_v15 = vmul.f32 %v5139_v17, %v2275_v60 }
 0x7e5   : > { %v4333_v38 = vpop.eup %4332  ;;  %v2260_v52 = vsub.f32 2.0, %v2244_v39  ;;  %v2290_v27 = vmul.f32 %v5141_v5, %v2274_v44 }
 0x7e6   : > { %v4335_v51 = vpop.eup %4334  ;;  %v2277_v50 = vmul.f32 %v4329_v58, %v2261_v53  ;;  %v2247_v48 = vmul.f32 %v4333_v38, %v2210_v56  ;;  %v2685_v58 = vld [vmem:[%s5354_s9 + $0x28] sm:$0xff] }
 0x7e7   : > { %v2276_v23 = vmul.f32 %v4331_v61, %v2260_v52  ;;  %v2246_v45 = vmul.f32 %v4335_v51, %v2208_v4  ;;  %3821 = vmatmul.mubr.f32.gmra.mrb[52].mxu1 %v2290_v27  ;;  %v2220_v26 = vpop.xlane.xlu0 %2219 }
 0x7e8   : > { %v2263_v63 = vsub.f32 2.0, %v2247_v48  ;;  %4344 = vrcp.f32 %v2220_v26  ;;  %3823 = vmatprep.mubr.f32.mxu1 %v2291_v15  ;;  %v2293_v7 = vmul.f32 %v5147_v22, %v2277_v50 }
 0x7e9   : > { %v4337_v30 = vpop.eup %4336  ;;  %v2262_v10 = vsub.f32 2.0, %v2246_v45  ;;  %v2292_v17 = vmul.f32 %v5149_v40, %v2276_v23 }
 0x7ea   : > { %v4339_v24 = vpop.eup %4338  ;;  %v2279_v14 = vmul.f32 %v4333_v38, %v2263_v63  ;;  %v2249_v2 = vmul.f32 %v4337_v30, %v2214_v19 }
 0x7eb   : > { %v2278_v5 = vmul.f32 %v4335_v51, %v2262_v10  ;;  %v2248_v55 = vmul.f32 %v4339_v24, %v2212_v34  ;;  %3824 = vmatmul.mubr.f32.gmra.mrb[54].mxu1 %v2292_v17 }
 0x7ec   : > { %v2265_v46 = vsub.f32 2.0, %v2249_v2  ;;  %3826 = vmatprep.mubr.f32.mxu1 %v2293_v7  ;;  %v2295_v43 = vmul.f32 %v5154_v18, %v2279_v14 }
 0x7ed   : > { %v4341_v36 = vpop.eup %4340  ;;  %v2264_v47 = vsub.f32 2.0, %v2248_v55  ;;  %v2294_v54 = vmul.f32 %v5156_v20, %v2278_v5 }
 0x7ee   : > { %v4343_v56 = vpop.eup %4342  ;;  %v2281_v22 = vmul.f32 %v4337_v30, %v2265_v46  ;;  %v2251_v16 = vmul.f32 %v4341_v36, %v2218_v0 }
 0x7ef   : > { %v2280_v4 = vmul.f32 %v4339_v24, %v2264_v47  ;;  %v2250_v59 = vmul.f32 %v4343_v56, %v2216_v49  ;;  %3827 = vmatmul.mubr.f32.gmra.mrb[56].mxu1 %v2294_v54  ;;  %v2686_v47 = vld [vmem:[%s5354_s9 + $0x30] sm:$0xff]  ;;  %v2687_v54 = vld [vmem:[%s5354_s9 + $0x38] sm:$0xff] }
 0x7f0   : > { %v2267_v40 = vsub.f32 2.0, %v2251_v16  ;;  %3829 = vmatprep.mubr.f32.mxu1 %v2295_v43  ;;  %v2297_v25 = vmul.f32 %v5160_v62, %v2281_v22  ;;  %v2680_v62 = vld [vmem:[%s5354_s9] sm:$0xff] }
 0x7f1   : > { %v2266_v21 = vsub.f32 2.0, %v2250_v59  ;;  %v2296_v37 = vmul.f32 %v5162_v42, %v2280_v4  ;;  %v2681_v42 = vld [vmem:[%s5354_s9 + $0x8] sm:$0xff]  ;;  %v3217_v22 = vld [vmem:[%s5356_s11] ss:$0 sm:$0xff] }
 0x7f2   : > { %v4345_v28 = vpop.eup %4344  ;;  %v2283_v6 = vmul.f32 %v4341_v36, %v2267_v40  ;;  %v4125_v41 = vpack.c.bf16 %v2681_v42, %v2680_v62 }
 0x7f3   : > { %v2282_v18 = vmul.f32 %v4343_v56, %v2266_v21  ;;  %v2252_v33 = vmul.f32 %v4345_v28, %v2220_v26  ;;  %3830 = vmatmul.mubr.f32.gmra.mrb[58].mxu1 %v2296_v37  ;;  %v4137_v56 = vpack.c.bf16 %v2687_v54, %v2686_v47 }
 0x7f4   : > { %3832 = vmatprep.mubr.f32.mxu1 %v2297_v25  ;;  %v2299_v20 = vmul.f32 %v5166_v8, %v2283_v6  ;;  %v2682_v8 = vld [vmem:[%s5354_s9 + $0x10] sm:$0xff]  ;;  %4126 = vmatprep.subr.bf16.mxu0 %v4125_v41 }
 0x7f5   : > { %v2268_v19 = vsub.f32 2.0, %v2252_v33  ;;  %v2298_v57 = vmul.f32 %v5168_v3, %v2282_v18  ;;  %v2683_v3 = vld [vmem:[%s5354_s9 + $0x18] sm:$0xff]  ;;  %4128 = vmatpush3.bf16.msra.mxu0 %v4125_v41 }
 0x7f6   : > { %v4129_v1 = vpack.c.bf16 %v2683_v3, %v2682_v8 }
 0x7f7   : > { %v2284_v11 = vmul.f32 %v4345_v28, %v2268_v19  ;;  %3833 = vmatmul.mubr.f32.gmra.mrb[60].mxu1 %v2298_v57 }
 0x7f8   : > { %3835 = vmatprep.mubr.f32.mxu1 %v2299_v20  ;;  %4130 = vmatprep.subr.bf16.mxu0 %v4129_v1 }
 0x7f9   : > { %v2300_v34 = vmul.f32 %v5172_v9, %v2284_v11  ;;  %v2684_v9 = vld [vmem:[%s5354_s9 + $0x20] sm:$0xff]  ;;  %4132 = vmatpush3.bf16.msra.mxu0 %v4129_v1 }
 0x7fa   : > { %v4133_v13 = vpack.c.bf16 %v2685_v58, %v2684_v9 }
 0x7fb   : > { %3836 = vmatmul.mubr.f32.gmra.mrb[62].mxu1 %v2300_v34 }
 0x7fc   : > { %4134 = vmatprep.subr.bf16.mxu0 %v4133_v13 }
 0x7fd   : > { %4136 = vmatpush3.bf16.msra.mxu0 %v4133_v13 }
 0x7fe   : > { %4138 = vmatprep.subr.bf16.mxu0 %v4137_v56 }
 0x801   : > { %4140 = vmatpush3.bf16.msra.mxu0 %v4137_v56 }
 0x8ac   : > { %v3816_v12 = vpop.f32.mrb[48].mxu1 }
 0x8ad   : > { %v2367_v61 = vpop.f32.mrb[49].mxu1  ;;  %v2447_v29 = vmax.f32 %v3816_v12, 0.0 }
 0x8ae   : > { %v2446_v60 = vmax.f32 %v2367_v61, 0.0 }
 0x8b0   : > { %3846 = vmatprep.mubr.msk.f32.mxu1 %vm1678_vm9, %v2446_v60 }
 0x8b1   : > { %3847 = vmatmul.mubr.msk.f32.vlgmr.msra.gmra.mrb[64].mxu1 %vm1678_vm9, %v2447_v29 }
 0x8b6   : > { %v3819_v0 = vpop.f32.mrb[50].mxu1 }
 0x8b7   : > { %v2377_v44 = vpop.f32.mrb[51].mxu1  ;;  %v2449_v49 = vmax.f32 %v3819_v0, 0.0 }
 0x8b8   : > { %v2448_v39 = vmax.f32 %v2377_v44, 0.0 }
 0x8ba   : > { %v3822_v53 = vpop.f32.mrb[52].mxu1  ;;  %3849 = vmatprep.mubr.msk.f32.mxu1 %vm1678_vm9, %v2448_v39 }
 0x8bb   : > { %v2387_v15 = vpop.f32.mrb[53].mxu1  ;;  %3850 = vmatmul.mubr.msk.f32.gmra.mrb[66].mxu1 %vm1678_vm9, %v2449_v49  ;;  %v2451_v52 = vmax.f32 %v3822_v53, 0.0 }
 0x8bc   : > { %v2450_v38 = vmax.f32 %v2387_v15, 0.0 }
 0x8be   : > { %v3825_v27 = vpop.f32.mrb[54].mxu1  ;;  %3852 = vmatprep.mubr.msk.f32.mxu1 %vm1678_vm9, %v2450_v38 }
 0x8bf   : > { %v2397_v51 = vpop.f32.mrb[55].mxu1  ;;  %3853 = vmatmul.mubr.msk.f32.gmra.mrb[68].mxu1 %vm1678_vm9, %v2451_v52  ;;  %v2453_v48 = vmax.f32 %v3825_v27, 0.0 }
 0x8c0   : > { %v2452_v50 = vmax.f32 %v2397_v51, 0.0 }
 0x8c2   : > { %v3828_v23 = vpop.f32.mrb[56].mxu1  ;;  %3855 = vmatprep.mubr.msk.f32.mxu1 %vm1678_vm9, %v2452_v50 }
 0x8c3   : > { %v2407_v45 = vpop.f32.mrb[57].mxu1  ;;  %3856 = vmatmul.mubr.msk.f32.gmra.mrb[70].mxu1 %vm1678_vm9, %v2453_v48  ;;  %v2455_v63 = vmax.f32 %v3828_v23, 0.0 }
 0x8c4   : > { %v2454_v26 = vmax.f32 %v2407_v45, 0.0 }
 0x8c6   : > { %v3831_v7 = vpop.f32.mrb[58].mxu1  ;;  %3858 = vmatprep.mubr.msk.f32.mxu1 %vm1678_vm9, %v2454_v26 }
 0x8c7   : > { %v2417_v30 = vpop.f32.mrb[59].mxu1  ;;  %3859 = vmatmul.mubr.msk.f32.gmra.mrb[72].mxu1 %vm1678_vm9, %v2455_v63  ;;  %v2457_v17 = vmax.f32 %v3831_v7, 0.0 }
 0x8c8   : > { %v2456_v10 = vmax.f32 %v2417_v30, 0.0 }
 0x8ca   : > { %v3834_v24 = vpop.f32.mrb[60].mxu1  ;;  %3861 = vmatprep.mubr.msk.f32.mxu1 %vm1678_vm9, %v2456_v10  ;;  %v3234_v10 = vld [vmem:[%s5356_s11 + $0x1] ss:$0 sm:$0xff] }
 0x8cb   : > { %v2427_v14 = vpop.f32.mrb[61].mxu1  ;;  %3862 = vmatmul.mubr.msk.f32.gmra.mrb[74].mxu1 %vm1678_vm9, %v2457_v17  ;;  %v2459_v5 = vmax.f32 %v3834_v24, 0.0 }
 0x8cc   : > { %v2458_v2 = vmax.f32 %v2427_v14, 0.0 }
 0x8ce   : > { %v3837_v55 = vpop.f32.mrb[62].mxu1  ;;  %3864 = vmatprep.mubr.msk.f32.mxu1 %vm1678_vm9, %v2458_v2 }
 0x8cf   : > { %v2437_v46 = vpop.f32.mrb[63].mxu1  ;;  %3865 = vmatmul.mubr.msk.f32.gmra.mrb[76].mxu1 %vm1678_vm9, %v2459_v5  ;;  %v2461_v36 = vmax.f32 %v3837_v55, 0.0 }
 0x8d0   : > { %v2460_v43 = vmax.f32 %v2437_v46, 0.0 }
 0x8d2   : > { %3867 = vmatprep.mubr.msk.f32.mxu1 %vm1678_vm9, %v2460_v43 }
 0x8d3   : > { %3868 = vmatmul.mubr.msk.f32.gmra.mrb[78].mxu1 %vm1678_vm9, %v2461_v36 }
 0x8d4   : > { %3942 = vmatprep.mubr.msk.f32.mxu1 %vm4411_vm1, %v4412_v32  ;;  %vm5381_vm1 = vcmask 523264  }
 0x8d5   : > { %vm5382_vm8 = vmmov %vm5381_vm1 }
 0x8d6   : > { %vm5383_vm0 = vmmov %vm5381_vm1 }
 0x8d7   : > { %vm5384_vm4 = vmmov %vm5383_vm0 }
 0x8d8   : > { %vm5385_vm9 = vmmov %vm5383_vm0 }
 0x8d9   : > { %vm5386_vm12 = vmmov %vm5383_vm0 }
 0x8da   : > { %vm5387_vm5 = vmmov %vm5383_vm0 }
 0x8db   : > { %vm5388_vm6 = vmmov %vm5383_vm0 }
 0x8dc   : > { %vm5389_vm2 = vmmov %vm5383_vm0 }
 0x8dd   : > { %vm5390_vm7 = vmmov %vm5383_vm0 }
 0x8de   : > { %vm5391_vm10 = vmmov %vm5383_vm0 }
 0x8df   : > { %vm5392_vm11 = vmmov %vm5383_vm0 }
 0x8e0   : > { %vm5393_vm14 = vmmov %vm5383_vm0 }
 0x8e1   : > { %vm5394_vm15 = vmmov %vm5383_vm0 }
 0x8e2   : > { %vm5395_vm13 = vmmov %vm5383_vm0 }
 0x984   : > { %v3848_v16 = vpop.f32.mrb[64].mxu1 }
 0x985   : > { %v2591_v4 = vadd.f32 %v3848_v16, %v3217_v22  ;;  %v2585_v59 = vpop.f32.mrb[65].mxu1 }
 0x986   : > { %v2586_v40 = vadd.f32 %v3217_v22, %v2585_v59 }
 0x987   : > { %v2665_v25 = vmax.f32 %v2591_v4, 0.0 }
 0x988   : > { %v2664_v32 = vmax.f32 %v2586_v40, 0.0 }
 0x98a   : > { %3886 = vmatprep.mubr.msk.f32.mxu0 %vm5381_vm1, %v2664_v32  ;;  %vm5396_vm1 = vmmov %vm5383_vm0 }
 0x98b   : > { %3887 = vmatmul.mubr.msk.f32.vlgmr.msra.gmra.mrb[36].mxu0 %vm5382_vm8, %v2665_v25  ;;  %vm5397_vm8 = vmmov %vm5383_vm0 }
 0x98e   : > { %v3851_v21 = vpop.f32.mrb[66].mxu1 }
 0x98f   : > { %v2601_v37 = vadd.f32 %v3851_v21, %v3217_v22  ;;  %v2595_v28 = vpop.f32.mrb[67].mxu1 }
 0x990   : > { %v2596_v6 = vadd.f32 %v3217_v22, %v2595_v28 }
 0x991   : > { %v2667_v20 = vmax.f32 %v2601_v37, 0.0 }
 0x992   : > { %v2666_v18 = vmax.f32 %v2596_v6, 0.0  ;;  %v3854_v33 = vpop.f32.mrb[68].mxu1 }
 0x993   : > { %v2611_v19 = vadd.f32 %v3854_v33, %v3217_v22  ;;  %v2605_v57 = vpop.f32.mrb[69].mxu1 }
 0x994   : > { %v2606_v11 = vadd.f32 %v3217_v22, %v2605_v57  ;;  %3889 = vmatprep.mubr.msk.f32.mxu0 %vm5383_vm0, %v2666_v18 }
 0x995   : > { %3890 = vmatmul.mubr.msk.f32.gmra.mrb[38].mxu0 %vm5384_vm4, %v2667_v20  ;;  %v2669_v42 = vmax.f32 %v2611_v19, 0.0 }
 0x996   : > { %v2668_v34 = vmax.f32 %v2606_v11, 0.0  ;;  %v3857_v62 = vpop.f32.mrb[70].mxu1 }
 0x997   : > { %v2621_v8 = vadd.f32 %v3857_v62, %v3217_v22  ;;  %v2615_v41 = vpop.f32.mrb[71].mxu1 }
 0x998   : > { %v2616_v3 = vadd.f32 %v3217_v22, %v2615_v41  ;;  %3892 = vmatprep.mubr.msk.f32.mxu0 %vm5385_vm9, %v2668_v34 }
 0x999   : > { %3893 = vmatmul.mubr.msk.f32.gmra.mrb[40].mxu0 %vm5386_vm12, %v2669_v42  ;;  %v2671_v58 = vmax.f32 %v2621_v8, 0.0 }
 0x99a   : > { %v2670_v1 = vmax.f32 %v2616_v3, 0.0  ;;  %v3860_v9 = vpop.f32.mrb[72].mxu1 }
 0x99b   : > { %v2631_v13 = vadd.f32 %v3860_v9, %v3217_v22  ;;  %v2625_v12 = vpop.f32.mrb[73].mxu1 }
 0x99c   : > { %v2626_v61 = vadd.f32 %v3217_v22, %v2625_v12  ;;  %3895 = vmatprep.mubr.msk.f32.mxu0 %vm5387_vm5, %v2670_v1 }
 0x99d   : > { %3896 = vmatmul.mubr.msk.f32.gmra.mrb[42].mxu0 %vm5388_vm6, %v2671_v58  ;;  %v2673_v0 = vmax.f32 %v2631_v13, 0.0 }
 0x99e   : > { %v2672_v60 = vmax.f32 %v2626_v61, 0.0  ;;  %v3863_v29 = vpop.f32.mrb[74].mxu1 }
 0x99f   : > { %v2641_v44 = vadd.f32 %v3863_v29, %v3217_v22  ;;  %v2635_v39 = vpop.f32.mrb[75].mxu1 }
 0x9a0   : > { %v2636_v49 = vadd.f32 %v3217_v22, %v2635_v39  ;;  %3898 = vmatprep.mubr.msk.f32.mxu0 %vm5389_vm2, %v2672_v60 }
 0x9a1   : > { %3899 = vmatmul.mubr.msk.f32.gmra.mrb[44].mxu0 %vm5390_vm7, %v2673_v0  ;;  %v2675_v38 = vmax.f32 %v2641_v44, 0.0 }
 0x9a2   : > { %v2674_v53 = vmax.f32 %v2636_v49, 0.0  ;;  %v3866_v15 = vpop.f32.mrb[76].mxu1 }
 0x9a3   : > { %v2651_v52 = vadd.f32 %v3866_v15, %v3217_v22  ;;  %v2645_v27 = vpop.f32.mrb[77].mxu1 }
 0x9a4   : > { %v2646_v51 = vadd.f32 %v3217_v22, %v2645_v27  ;;  %3901 = vmatprep.mubr.msk.f32.mxu0 %vm5391_vm10, %v2674_v53 }
 0x9a5   : > { %3902 = vmatmul.mubr.msk.f32.gmra.mrb[46].mxu0 %vm5392_vm11, %v2675_v38  ;;  %v2677_v23 = vmax.f32 %v2651_v52, 0.0 }
 0x9a6   : > { %v2676_v50 = vmax.f32 %v2646_v51, 0.0  ;;  %v3869_v48 = vpop.f32.mrb[78].mxu1 }
 0x9a7   : > { %v2661_v45 = vadd.f32 %v3869_v48, %v3217_v22  ;;  %v2655_v26 = vpop.f32.mrb[79].mxu1 }
 0x9a8   : > { %v2656_v63 = vadd.f32 %v3217_v22, %v2655_v26  ;;  %3904 = vmatprep.mubr.msk.f32.mxu0 %vm5393_vm14, %v2676_v50  ;;  %v2907_v26 = vpop.permute.xlu1 %2906 }
 0x9a9   : > { %3905 = vmatmul.mubr.msk.f32.gmra.mrb[48].mxu0 %vm5394_vm15, %v2677_v23  ;;  %v2679_v30 = vmax.f32 %v2661_v45, 0.0  ;;  %v2902_v45 = vld [vmem:[%s5355_s10] sm:$0x1] }
 0x9aa   : > { %v2678_v7 = vmax.f32 %v2656_v63, 0.0 }
 0x9ac   : > { %3907 = vmatprep.mubr.msk.f32.mxu0 %vm5395_vm13, %v2678_v7 }
 0x9ad   : > { %3908 = vmatmul.mubr.msk.f32.gmra.mrb[50].mxu0 %vm5396_vm1, %v2679_v30 }
 0xa5e   : > { %v3888_v17 = vpop.f32.mrb[36].mxu0 }
 0xa5f   : > { %v2813_v24 = vadd.f32 %v3888_v17, %v3234_v10  ;;  %v2807_v14 = vpop.f32.mrb[37].mxu0 }
 0xa60   : > { %v2808_v2 = vadd.f32 %v3234_v10, %v2807_v14 }
 0xa61   : > { %v2887_v5 = vmax.f32 %v2813_v24, 0.0 }
 0xa62   : > { %v2886_v55 = vmax.f32 %v2808_v2, 0.0 }
 0xa64   : > { %v4142_v46 = vpack.c.bf16 %v2887_v5, %v2886_v55 }
 0xa66   : > { %4144 = vmatpush3.bf16.xpose.msk.msra.mxu1 %vm4606_vm3, %v4142_v46 }
 0xa67   : > { %4145 = vmatprep.subr.bf16.mxu1 %v4410_v31 }
 0xa68   : > { %v3891_v43 = vpop.f32.mrb[38].mxu0 }
 0xa69   : > { %v2823_v36 = vadd.f32 %v3891_v43, %v3234_v10  ;;  %v2817_v47 = vpop.f32.mrb[39].mxu0 }
 0xa6a   : > { %v2818_v54 = vadd.f32 %v3234_v10, %v2817_v47 }
 0xa6b   : > { %v2889_v56 = vmax.f32 %v2823_v36, 0.0 }
 0xa6c   : > { %v2888_v22 = vmax.f32 %v2818_v54, 0.0  ;;  %v3894_v16 = vpop.f32.mrb[40].mxu0 }
 0xa6d   : > { %v2833_v4 = vadd.f32 %v3894_v16, %v3234_v10  ;;  %v2827_v59 = vpop.f32.mrb[41].mxu0 }
 0xa6e   : > { %v4146_v40 = vpack.c.bf16 %v2889_v56, %v2888_v22  ;;  %v2828_v32 = vadd.f32 %v3234_v10, %v2827_v59 }
 0xa6f   : > { %v2891_v25 = vmax.f32 %v2833_v4, 0.0 }
 0xa70   : > { %v2890_v21 = vmax.f32 %v2828_v32, 0.0  ;;  %v3897_v37 = vpop.f32.mrb[42].mxu0  ;;  %4148 = vmatpush3.bf16.xpose.msk.msra.mxu1 %vm4606_vm3, %v4146_v40 }
 0xa71   : > { %v2843_v28 = vadd.f32 %v3897_v37, %v3234_v10  ;;  %v2837_v6 = vpop.f32.mrb[43].mxu0  ;;  %4149 = vmatprep.subr.bf16.mxu1 %v4410_v31 }
 0xa72   : > { %v4150_v18 = vpack.c.bf16 %v2891_v25, %v2890_v21  ;;  %v2838_v33 = vadd.f32 %v3234_v10, %v2837_v6 }
 0xa73   : > { %v2893_v20 = vmax.f32 %v2843_v28, 0.0 }
 0xa74   : > { %v2892_v19 = vmax.f32 %v2838_v33, 0.0  ;;  %v3900_v57 = vpop.f32.mrb[44].mxu0 }
 0xa75   : > { %v2853_v11 = vadd.f32 %v3900_v57, %v3234_v10  ;;  %v2847_v34 = vpop.f32.mrb[45].mxu0 }
 0xa76   : > { %v4154_v62 = vpack.c.bf16 %v2893_v20, %v2892_v19  ;;  %v2848_v42 = vadd.f32 %v3234_v10, %v2847_v34 }
 0xa77   : > { %v2895_v8 = vmax.f32 %v2853_v11, 0.0 }
 0xa78   : > { %v2894_v41 = vmax.f32 %v2848_v42, 0.0  ;;  %v3903_v3 = vpop.f32.mrb[46].mxu0  ;;  %4152 = vmatpush3.bf16.xpose.msk.msra.mxu1 %vm4606_vm3, %v4150_v18 }
 0xa79   : > { %v2863_v1 = vadd.f32 %v3903_v3, %v3234_v10  ;;  %v2857_v9 = vpop.f32.mrb[47].mxu0  ;;  %4153 = vmatprep.subr.bf16.mxu1 %v4410_v31 }
 0xa7a   : > { %v4158_v58 = vpack.c.bf16 %v2895_v8, %v2894_v41  ;;  %v2858_v13 = vadd.f32 %v3234_v10, %v2857_v9 }
 0xa7b   : > { %v2897_v12 = vmax.f32 %v2863_v1, 0.0 }
 0xa7c   : > { %v2896_v61 = vmax.f32 %v2858_v13, 0.0  ;;  %v3906_v60 = vpop.f32.mrb[48].mxu0 }
 0xa7d   : > { %v2873_v29 = vadd.f32 %v3906_v60, %v3234_v10  ;;  %v2867_v0 = vpop.f32.mrb[49].mxu0 }
 0xa7e   : > { %v4162_v44 = vpack.c.bf16 %v2897_v12, %v2896_v61  ;;  %v2868_v39 = vadd.f32 %v3234_v10, %v2867_v0 }
 0xa7f   : > { %v2899_v49 = vmax.f32 %v2873_v29, 0.0 }
 0xa80   : > { %v2898_v53 = vmax.f32 %v2868_v39, 0.0  ;;  %v3909_v15 = vpop.f32.mrb[50].mxu0  ;;  %4156 = vmatpush3.bf16.xpose.msk.msra.mxu1 %vm4606_vm3, %v4154_v62 }
 0xa81   : > { %v2883_v38 = vadd.f32 %v3909_v15, %v3234_v10  ;;  %v2877_v52 = vpop.f32.mrb[51].mxu0  ;;  %4157 = vmatprep.subr.bf16.mxu1 %v4410_v31 }
 0xa82   : > { %v4166_v27 = vpack.c.bf16 %v2899_v49, %v2898_v53  ;;  %v2878_v51 = vadd.f32 %v3234_v10, %v2877_v52 }
 0xa83   : > { %v2901_v50 = vmax.f32 %v2883_v38, 0.0 }
 0xa84   : > { %v2900_v48 = vmax.f32 %v2878_v51, 0.0 }
 0xa86   : > { %v4170_v23 = vpack.c.bf16 %v2901_v50, %v2900_v48 }
 0xa88   : > { %4160 = vmatpush3.bf16.xpose.msk.msra.mxu1 %vm4606_vm3, %v4158_v58 }
 0xa89   : > { %4161 = vmatprep.subr.bf16.mxu1 %v4410_v31 }
 0xa90   : > { %4164 = vmatpush3.bf16.xpose.msk.msra.mxu1 %vm4606_vm3, %v4162_v44 }
 0xa91   : > { %4165 = vmatprep.subr.bf16.mxu1 %v4410_v31 }
 0xa98   : > { %4168 = vmatpush3.bf16.xpose.msk.msra.mxu1 %vm4606_vm3, %v4166_v27 }
 0xa99   : > { %4169 = vmatprep.subr.bf16.mxu1 %v4410_v31 }
 0xaa0   : > { %4172 = vmatpush3.bf16.xpose.msk.msra.mxu1 %vm4606_vm3, %v4170_v23 }
 0xaa7   : > { %3943 = vmatmul.mubr.msk.f32.vlgmr.msra.gmra.mrb[80].mxu1 %vm5397_vm8, %v2902_v45 }
 0xb7a   : > { %v3026_v63 = vpop.f32.mrb[80].mxu1 }
 0xb7b   : > { %v3027_v7 = vadd.f32 %v3026_v63, %v2907_v26  ;;  %v3944_v30 = vpop.f32.mrb[81].mxu1 }
 0xb7d   : > { %3030 = vst [vmem:[%s422_s28] sm:$0x1] %v3027_v7 }
 0xb7e   : > { %4359 = shalt.err (!%p4356_p3)
}
 0xb7f   : > { %s4360_s19 = scalar_lea.hbm %s5303_s18, 16  ;;  %s4364_s16 = scalar_lea.hbm %s5357_s12, 32 }
 0xb80   : > { %p4361_p4 = scmp.ne.s32.totalorder %s5303_s18, %s4360_s19  ;;  %p4365_p9 = scmp.lt.u32.totalorder %s5303_s18, %s5357_s12 }
 0xb81   : > { %p4366_p10 = scmp.lt.u32.totalorder %s4364_s16, %s4360_s19  ;;  %p4368_p12 = scmp.lt.u32.totalorder %s4360_s19, %s5303_s18 }
 0xb82   : > { %p4362_p7 = pnand %p4361_p4, %p4515_p5 }
 0xb83   : > { %p4367_p11 = por %p4366_p10, %p4365_p9 }
 0xb84   : > { %p4363_p8 = pneg %p4362_p7 }
 0xb85   : > { %p4369_p13 = por %p4368_p12, %p4367_p11 }
 0xb87   : > { %p4370_p0 = pnand %p4369_p13, %p4363_p8 }
 0xb89   : > { %4373 = shalt.err (!%p4370_p0)
}
 0xb8a   : > { %4173 = dma.vmem_to_hbm [thread:$0]  (%p4515_p5), %s5305_s29, 16, %s5303_s18, %s3032_s20  }
 0xb8b PF: > { %p4179_p1 = scmp.ge.s32.totalorder %s4408_s24, 2  ;;  %s3056_s1 = sand.u32 1, %s4396_s21  }
 0xb8c   : > { %s3057_s26 = scalar_lea.sflag [#allocation3], %s3056_s1 }
 0xb8d   : > { %p4176_p2 = pnand %p4179_p1, %p4519_p6 }
 0xb8f   : > { %4391 = dma.done.wait (!%p4176_p2), %s3057_s26, 16  }
 0xb90   : > { %4393 = vsyncadd (!%p4176_p2), %s3057_s26, 4294967280  ;;  %p22_p3 = scmp.ge.s32.totalorder %s4503_s27, 4   ;;  %s5398_s21 = smov %s4400_s22 }
 0xb91   : > { %s5399_s22 = smov %s4404_s23  ;;  %s5400_s23 = smov %s4513_s30 }
 0xb92   : > { %s5401_s24 = smov %s4503_s27  ;;  %24 = sbr.rel (!%p22_p3) target bundleno = 6 (0x6), region = 106 }
 0xb99   :  { %3061 = vsyncpa [#allocation3], 1 }
 0xb9a   :  { %3063 = vsyncpa [#allocation3 + $0x1], 1 }

</bundles_post_ra>
